<compile_context>
chip_gen: v7x
topology: tpu7x:2x2x1
jax: 0.10.0
libtpu: 0.0.40
codegen_flags: <defaults>
</compile_context>

<pallas_src>
import functools

import jax
import jax.numpy as jnp
from jax import lax
from jax.experimental import pallas as pl
from jax.experimental.pallas import tpu as pltpu


HIDDEN = 128          # fixed by the PyTorch module
_NEG_BIG = -1e30      # softmax mask value for non-actor lanes


def _round_up(x, m):
    return (x + m - 1) // m * m


def _actor_critic_kernel(x_ref, w1_ref, b1_ref, w2_ref, b2_ref, w3_ref, b3_ref,
                         out_ref, *, action_dim):
    x = x_ref[...]

    # fused layer 1: [TB, K_pad] @ [K_pad, 256] -> actor hidden | critic hidden
    h = jnp.dot(x, w1_ref[...], preferred_element_type=jnp.float32) + b1_ref[...]
    h = jnp.maximum(h, 0.0)

    # fused (block-diagonal) layer 2: [TB, 256] @ [256, 256]
    h = jnp.dot(h, w2_ref[...], preferred_element_type=jnp.float32) + b2_ref[...]
    h = jnp.maximum(h, 0.0)

    # fused layer 3: [TB, 256] @ [256, OUT] ; lanes [0:A]=actor logits, lane A=value
    y = jnp.dot(h, w3_ref[...], preferred_element_type=jnp.float32) + b3_ref[...]

    lane = lax.broadcasted_iota(jnp.int32, y.shape, 1)
    is_actor = lane < action_dim

    # numerically-stable softmax over the actor lanes only
    logits = jnp.where(is_actor, y, _NEG_BIG)
    m = jnp.max(logits, axis=-1, keepdims=True)
    e = jnp.exp(logits - m)                          # 0 on non-actor lanes
    denom = jnp.sum(e, axis=-1, keepdims=True)
    r = pl.reciprocal(denom, approx=True)            # EUP slot
    r = r * (2.0 - denom * r)                        # one Newton step -> f32 accurate
    probs = e * r

    # lane-dense output slab: probs in [0:A], raw critic value at lane A, zeros after
    out_ref[...] = jnp.where(lane == action_dim, y, probs).astype(out_ref.dtype)


@functools.partial(jax.jit, static_argnames=("action_dim",))
def actor_critic_forward(state, fused, *, action_dim):
    """state: [B, state_dim] f32. Returns (action_probs [B, action_dim], value [B, 1])."""
    w1, b1, w2, b2, w3, b3 = fused
    B, state_dim = state.shape
    K = w1.shape[0]            # padded contraction dim (multiple of 128)
    H2 = w1.shape[1]           # 2 * HIDDEN = 256
    OUT = w3.shape[1]          # lane-dense output width (multiple of 128)

    # batch tile: up to 256 rows (fills v6e/v7x MXU rows, 2 passes on v5e)
    TB = min(256, _round_up(B, 8))
    B_pad = _round_up(B, TB)
    grid = (B_pad // TB,)

    # zero-pad batch rows and feature columns (zeros are exact no-ops in the matmul)
    x_pad = jnp.pad(state, ((0, B_pad - B), (0, K - state_dim)))

    out = pl.pallas_call(
        functools.partial(_actor_critic_kernel, action_dim=action_dim),
        out_shape=jax.ShapeDtypeStruct((B_pad, OUT), jnp.float32),
        grid=grid,
        in_specs=[
            pl.BlockSpec((TB, K), lambda i: (i, 0)),      # streamed batch tile
            pl.BlockSpec((K, H2), lambda i: (0, 0)),      # resident fused weights
            pl.BlockSpec((1, H2), lambda i: (0, 0)),
            pl.BlockSpec((H2, H2), lambda i: (0, 0)),
            pl.BlockSpec((1, H2), lambda i: (0, 0)),
            pl.BlockSpec((H2, OUT), lambda i: (0, 0)),
            pl.BlockSpec((1, OUT), lambda i: (0, 0)),
        ],
        out_specs=pl.BlockSpec((TB, OUT), lambda i: (i, 0)),
        compiler_params=pltpu.CompilerParams(
            dimension_semantics=("parallel",),            # megacore sharding on v7x
            vmem_limit_bytes=32 << 20,
        ),
    )(x_pad, w1, b1, w2, b2, w3, b3)

    probs = out[:B, :action_dim]
    value = out[:B, action_dim:action_dim + 1]
    return probs, value


def init_params(key, state_dim, action_dim):
    """Matches nn.Linear default init (uniform +/- 1/sqrt(fan_in)).
    Weights stored [in, out] (transpose of PyTorch's [out, in])."""
    def linear(k, fan_in, fan_out):
        kw, kb = jax.random.split(k)
        bound = 1.0 / jnp.sqrt(fan_in)
        w = jax.random.uniform(kw, (fan_in, fan_out), jnp.float32, -bound, bound)
        b = jax.random.uniform(kb, (1, fan_out), jnp.float32, -bound, bound)
        return w, b

    keys = jax.random.split(key, 6)
    aw1, ab1 = linear(keys[0], state_dim, HIDDEN)
    aw2, ab2 = linear(keys[1], HIDDEN, HIDDEN)
    aw3, ab3 = linear(keys[2], HIDDEN, action_dim)
    cw1, cb1 = linear(keys[3], state_dim, HIDDEN)
    cw2, cb2 = linear(keys[4], HIDDEN, HIDDEN)
    cw3, cb3 = linear(keys[5], HIDDEN, 1)
    return dict(
        aw1=aw1, ab1=ab1, aw2=aw2, ab2=ab2, aw3=aw3, ab3=ab3,
        cw1=cw1, cb1=cb1, cw2=cw2, cb2=cb2, cw3=cw3, cb3=cb3,
    )


def fuse_params(params, state_dim, action_dim):
    """Fuse actor/critic weights into a single 3-layer network (done once, offline)."""
    H = HIDDEN
    A = action_dim
    K = _round_up(state_dim, 128)          # pad MXU contraction dim
    OUT = _round_up(A + 1, 128)            # lane-dense output width

    w1 = jnp.zeros((K, 2 * H), jnp.float32)
    w1 = w1.at[:state_dim, :H].set(params["aw1"])
    w1 = w1.at[:state_dim, H:].set(params["cw1"])
    b1 = jnp.concatenate([params["ab1"], params["cb1"]], axis=1)

    w2 = jnp.zeros((2 * H, 2 * H), jnp.float32)
    w2 = w2.at[:H, :H].set(params["aw2"])
    w2 = w2.at[H:, H:].set(params["cw2"])
    b2 = jnp.concatenate([params["ab2"], params["cb2"]], axis=1)

    w3 = jnp.zeros((2 * H, OUT), jnp.float32)
    w3 = w3.at[:H, :A].set(params["aw3"])
    w3 = w3.at[H:, A:A + 1].set(params["cw3"])
    b3 = jnp.zeros((1, OUT), jnp.float32)
    b3 = b3.at[:, :A].set(params["ab3"])
    b3 = b3.at[:, A:A + 1].set(params["cb3"])

    return (w1, b1, w2, b2, w3, b3)


def _reference_forward(state, params):
    """Pure-JAX reference for the correctness check."""
    def mlp(x, w1, b1, w2, b2, w3, b3):
        h = jnp.maximum(x @ w1 + b1, 0.0)
        h = jnp.maximum(h @ w2 + b2, 0.0)
        return h @ w3 + b3

    logits = mlp(state, params["aw1"], params["ab1"], params["aw2"],
                 params["ab2"], params["aw3"], params["ab3"])
    probs = jax.nn.softmax(logits, axis=-1)
    value = mlp(state, params["cw1"], params["cb1"], params["cw2"],
                params["cb2"], params["cw3"], params["cb3"])
    return probs, value


if __name__ == "__main__":
    key = jax.random.PRNGKey(0)
    k_params, k_state = jax.random.split(key)

    batch = 300          # exercises multi-step grid (TB=256 -> 2 tiles) + batch padding
    state_dim = 64       # small synthetic board encoding (padded to 128 inside)
    action_dim = 32      # small synthetic move space

    params = init_params(k_params, state_dim, action_dim)
    fused = fuse_params(params, state_dim, action_dim)
    state = jax.random.normal(k_state, (batch, state_dim), jnp.float32)

    probs, value = actor_critic_forward(state, fused, action_dim=action_dim)
    jax.block_until_ready((probs, value))

    # sanity check against pure-JAX reference
    ref_probs, ref_value = _reference_forward(state, params)
    assert probs.shape == (batch, action_dim) and value.shape == (batch, 1)
    assert jnp.allclose(probs, ref_probs, atol=1e-5, rtol=1e-5)
    assert jnp.allclose(value, ref_value, atol=1e-5, rtol=1e-5)
    assert jnp.allclose(jnp.sum(probs, axis=-1), 1.0, atol=1e-5)

    print("KERNEL_OK")
</pallas_src>

<mosaic_0001>
module attributes {stable_mosaic.version = 11 : i64} {
  func.func @_actor_critic_kernel(%arg0: i32, %arg1: memref<256x128xf32, #tpu.memory_space<vmem>>, %arg2: memref<128x256xf32, #tpu.memory_space<vmem>>, %arg3: memref<1x256xf32, #tpu.memory_space<vmem>>, %arg4: memref<256x256xf32, #tpu.memory_space<vmem>>, %arg5: memref<1x256xf32, #tpu.memory_space<vmem>>, %arg6: memref<256x128xf32, #tpu.memory_space<vmem>>, %arg7: memref<1x128xf32, #tpu.memory_space<vmem>>, %arg8: memref<256x128xf32, #tpu.memory_space<vmem>>) attributes {dimension_semantics = [#tpu.dimension_semantics<parallel>], iteration_bounds = array<i64: 2>, scalar_prefetch = 0 : i64, scratch_operands = 0 : i64, tpu.core_type = #tpu.core_type<tc>, window_params = [{transform_indices = @transform_0, window_bounds = array<i64: 256, 128>}, {pipeline_mode = #tpu.pipeline_mode<synchronous>, transform_indices = @transform_1, window_bounds = array<i64: 128, 256>}, {pipeline_mode = #tpu.pipeline_mode<synchronous>, transform_indices = @transform_2, window_bounds = array<i64: 1, 256>}, {pipeline_mode = #tpu.pipeline_mode<synchronous>, transform_indices = @transform_3, window_bounds = array<i64: 256, 256>}, {pipeline_mode = #tpu.pipeline_mode<synchronous>, transform_indices = @transform_4, window_bounds = array<i64: 1, 256>}, {pipeline_mode = #tpu.pipeline_mode<synchronous>, transform_indices = @transform_5, window_bounds = array<i64: 256, 128>}, {pipeline_mode = #tpu.pipeline_mode<synchronous>, transform_indices = @transform_6, window_bounds = array<i64: 1, 128>}, {transform_indices = @transform_7, window_bounds = array<i64: 256, 128>}]} {
    %c0 = arith.constant 0 : index
    %c0_0 = arith.constant 0 : index
    %0 = vector.load %arg1[%c0, %c0_0] : memref<256x128xf32, #tpu.memory_space<vmem>>, vector<256x128xf32>
    %c0_1 = arith.constant 0 : index
    %c0_2 = arith.constant 0 : index
    %1 = vector.load %arg2[%c0_1, %c0_2] : memref<128x256xf32, #tpu.memory_space<vmem>>, vector<128x256xf32>
    %cst = arith.constant dense<0.000000e+00> : vector<256x256xf32>
    %2 = tpu.matmul %0, %1, %cst {dimension_numbers = #tpu.dot_dimension_numbers<[1], [0], [0], [1], [0, 0, 1, 1], [], []>} : vector<256x128xf32>, vector<128x256xf32>, vector<256x256xf32> -> vector<256x256xf32>
    %c0_3 = arith.constant 0 : index
    %c0_4 = arith.constant 0 : index
    %3 = vector.load %arg3[%c0_3, %c0_4] : memref<1x256xf32, #tpu.memory_space<vmem>>, vector<1x256xf32>
    %4 = vector.broadcast %3 : vector<1x256xf32> to vector<256x256xf32>
    %5 = arith.addf %2, %4 : vector<256x256xf32>
    %cst_5 = arith.constant 0.000000e+00 : f32
    %6 = vector.broadcast %cst_5 : f32 to vector<256x256xf32>
    %7 = arith.maximumf %5, %6 : vector<256x256xf32>
    %c0_6 = arith.constant 0 : index
    %c0_7 = arith.constant 0 : index
    %8 = vector.load %arg4[%c0_6, %c0_7] : memref<256x256xf32, #tpu.memory_space<vmem>>, vector<256x256xf32>
    %cst_8 = arith.constant dense<0.000000e+00> : vector<256x256xf32>
    %9 = tpu.matmul %7, %8, %cst_8 {dimension_numbers = #tpu.dot_dimension_numbers<[1], [0], [0], [1], [0, 0, 1, 1], [], []>} : vector<256x256xf32>, vector<256x256xf32>, vector<256x256xf32> -> vector<256x256xf32>
    %c0_9 = arith.constant 0 : index
    %c0_10 = arith.constant 0 : index
    %10 = vector.load %arg5[%c0_9, %c0_10] : memref<1x256xf32, #tpu.memory_space<vmem>>, vector<1x256xf32>
    %11 = vector.broadcast %10 : vector<1x256xf32> to vector<256x256xf32>
    %12 = arith.addf %9, %11 : vector<256x256xf32>
    %cst_11 = arith.constant 0.000000e+00 : f32
    %13 = vector.broadcast %cst_11 : f32 to vector<256x256xf32>
    %14 = arith.maximumf %12, %13 : vector<256x256xf32>
    %c0_12 = arith.constant 0 : index
    %c0_13 = arith.constant 0 : index
    %15 = vector.load %arg6[%c0_12, %c0_13] : memref<256x128xf32, #tpu.memory_space<vmem>>, vector<256x128xf32>
    %cst_14 = arith.constant dense<0.000000e+00> : vector<256x128xf32>
    %16 = tpu.matmul %14, %15, %cst_14 {dimension_numbers = #tpu.dot_dimension_numbers<[1], [0], [0], [1], [0, 0, 1, 1], [], []>} : vector<256x256xf32>, vector<256x128xf32>, vector<256x128xf32> -> vector<256x128xf32>
    %c0_15 = arith.constant 0 : index
    %c0_16 = arith.constant 0 : index
    %17 = vector.load %arg7[%c0_15, %c0_16] : memref<1x128xf32, #tpu.memory_space<vmem>>, vector<1x128xf32>
    %18 = vector.broadcast %17 : vector<1x128xf32> to vector<256x128xf32>
    %19 = arith.addf %16, %18 : vector<256x128xf32>
    %20 = tpu.iota {dimensions = array<i32: 1>} : vector<256x128xi32>
    %c32_i32 = arith.constant 32 : i32
    %21 = vector.broadcast %c32_i32 : i32 to vector<256x128xi32>
    %22 = arith.cmpi slt, %20, %21 : vector<256x128xi32>
    %cst_17 = arith.constant -1.000000e+30 : f32
    %23 = vector.broadcast %cst_17 : f32 to vector<256x128xf32>
    %24 = arith.select %22, %19, %23 : vector<256x128xi1>, vector<256x128xf32>
    %cst_18 = arith.constant dense<0xFF800000> : vector<256xf32>
    %25 = vector.multi_reduction <maximumf>, %24, %cst_18 [1] : vector<256x128xf32> to vector<256xf32>
    %26 = vector.shape_cast %25 : vector<256xf32> to vector<256x1xf32>
    %27 = vector.broadcast %26 : vector<256x1xf32> to vector<256x128xf32>
    %28 = arith.subf %24, %27 : vector<256x128xf32>
    %29 = math.exp %28 : vector<256x128xf32>
    %cst_19 = arith.constant dense<0.000000e+00> : vector<256xf32>
    %30 = vector.multi_reduction <add>, %29, %cst_19 [1] : vector<256x128xf32> to vector<256xf32>
    %31 = vector.shape_cast %30 : vector<256xf32> to vector<256x1xf32>
    %32 = tpu.reciprocal %31 {approx = true} : vector<256x1xf32> -> vector<256x1xf32>
    %33 = arith.mulf %31, %32 : vector<256x1xf32>
    %cst_20 = arith.constant 2.000000e+00 : f32
    %34 = vector.broadcast %cst_20 : f32 to vector<256x1xf32>
    %35 = arith.subf %34, %33 : vector<256x1xf32>
    %36 = arith.mulf %32, %35 : vector<256x1xf32>
    %37 = vector.broadcast %36 : vector<256x1xf32> to vector<256x128xf32>
    %38 = arith.mulf %29, %37 : vector<256x128xf32>
    %c32_i32_21 = arith.constant 32 : i32
    %39 = vector.broadcast %c32_i32_21 : i32 to vector<256x128xi32>
    %40 = arith.cmpi eq, %20, %39 : vector<256x128xi32>
    %41 = arith.select %40, %19, %38 : vector<256x128xi1>, vector<256x128xf32>
    %c0_22 = arith.constant 0 : index
    %c0_23 = arith.constant 0 : index
    %42 = vector.load %arg8[%c0_22, %c0_23] : memref<256x128xf32, #tpu.memory_space<vmem>>, vector<256x128xf32>
    tpu.vector_store %arg8[%c0_22, %c0_23], %41 {strides = array<i32>} : memref<256x128xf32, #tpu.memory_space<vmem>>, vector<256x128xf32>,
    return
  }
  func.func @transform_0(%arg0: i32) -> (i32, i32) {
    %c0_i32 = arith.constant 0 : i32
    %c0_i32_0 = arith.constant 0 : i32
    return %arg0, %c0_i32 : i32, i32
  }
  func.func @transform_1(%arg0: i32) -> (i32, i32) {
    %c0_i32 = arith.constant 0 : i32
    %c0_i32_0 = arith.constant 0 : i32
    %c0_i32_1 = arith.constant 0 : i32
    return %c0_i32, %c0_i32_0 : i32, i32
  }
  func.func @transform_2(%arg0: i32) -> (i32, i32) {
    %c0_i32 = arith.constant 0 : i32
    %c0_i32_0 = arith.constant 0 : i32
    %c0_i32_1 = arith.constant 0 : i32
    return %c0_i32, %c0_i32_0 : i32, i32
  }
  func.func @transform_3(%arg0: i32) -> (i32, i32) {
    %c0_i32 = arith.constant 0 : i32
    %c0_i32_0 = arith.constant 0 : i32
    %c0_i32_1 = arith.constant 0 : i32
    return %c0_i32, %c0_i32_0 : i32, i32
  }
  func.func @transform_4(%arg0: i32) -> (i32, i32) {
    %c0_i32 = arith.constant 0 : i32
    %c0_i32_0 = arith.constant 0 : i32
    %c0_i32_1 = arith.constant 0 : i32
    return %c0_i32, %c0_i32_0 : i32, i32
  }
  func.func @transform_5(%arg0: i32) -> (i32, i32) {
    %c0_i32 = arith.constant 0 : i32
    %c0_i32_0 = arith.constant 0 : i32
    %c0_i32_1 = arith.constant 0 : i32
    return %c0_i32, %c0_i32_0 : i32, i32
  }
  func.func @transform_6(%arg0: i32) -> (i32, i32) {
    %c0_i32 = arith.constant 0 : i32
    %c0_i32_0 = arith.constant 0 : i32
    %c0_i32_1 = arith.constant 0 : i32
    return %c0_i32, %c0_i32_0 : i32, i32
  }
  func.func @transform_7(%arg0: i32) -> (i32, i32) {
    %c0_i32 = arith.constant 0 : i32
    %c0_i32_0 = arith.constant 0 : i32
    return %arg0, %c0_i32 : i32, i32
  }
}

</mosaic_0001>

<bundles_post_ra>
// kernel: actor_critic_forward.1
= control target key start
LH: loop header
LB: loop body
LE: loop exit
PB: predicated region body
PF: predicated region fallthrough
CT: control target
= control target key end

     0   :  { %s2240_s24 = smov 0   ;;  %s3571_s0 = inlined_call_operand.vmem [shape: f32[512,128], index: 0, kind: input, shape index: {}]   ;;  %s3572_s1 = inlined_call_operand.vmem [shape: f32[128,256], index: 1, kind: input, shape index: {}]   ;;  %s3573_s2 = inlined_call_operand.vmem [shape: f32[1,256], index: 2, kind: input, shape index: {}]   ;;  %s3574_s3 = inlined_call_operand.vmem [shape: f32[256,256], index: 3, kind: input, shape index: {}]   ;;  %s3575_s4 = inlined_call_operand.vmem [shape: f32[1,256], index: 4, kind: input, shape index: {}]   ;;  %s3576_s5 = inlined_call_operand.vmem [shape: f32[256,128], index: 5, kind: input, shape index: {}]   ;;  %s3577_s6 = inlined_call_operand.vmem [shape: f32[1,128], index: 6, kind: input, shape index: {}]   ;;  %s3578_s7 = inlined_call_operand.vmem [shape: f32[512,128], index: 7, kind: output, shape index: {}]  }
   0x1 LB: > { %s1880_s25 = sadd.s32 4294967295, %s2196_s24   ;;  %p1884_p0 = scmp.ge.s32.totalorder %s2196_s24, 1  ;;  %s2196_s24 = sphi %s2240_s24, %s17_s24  }
   0x2   : > { %p238_p1 = scmp.lt.s32.totalorder %s2196_s24, 3 }
   0x4   : > { %p239_p2 = pnand %p1884_p0, %p238_p1 }
   0x6   : > { %242 = sbr.rel (%p239_p2) target bundleno = 1143 (0x477), region = 48 }
   0xd   : > { %v315_v0 = vld [vmem:[%s3572_s1 + $0x8] sm:$0xff]  ;;  %v317_v1 = vld [vmem:[%s3572_s1 + $0x18] sm:$0xff]  ;;  %v314_v2 = vld [vmem:[%s3572_s1] sm:$0xff]  ;;  %v2198_v7 = vmov 0.0   ;;  %s1885_s28 = sshll.u32 %s1880_s25, 5 }
   0xe   : > { %v1892_v3 = vpack.c.bf16 %v317_v1, %v315_v0  ;;  %v316_v4 = vld [vmem:[%s3572_s1 + $0x10] sm:$0xff]  ;;  %v319_v5 = vld [vmem:[%s3572_s1 + $0x28] sm:$0xff]  ;;  %v321_v6 = vld [vmem:[%s3572_s1 + $0x38] sm:$0xff]  ;;  %422 = vmatprep.mubr.f32.mxu0 %v2198_v7  ;;  %518 = vmatprep.mubr.f32.mxu1 %v2198_v7  ;;  %p271_p3 = scmp.lt.s32.totalorder %s1885_s28, 63 }
   0xf   : > { %v1894_v8 = vpack.c.bf16 %v316_v4, %v314_v2  ;;  %v1896_v9 = vpack.c.bf16 %v321_v6, %v319_v5  ;;  %v318_v10 = vld [vmem:[%s3572_s1 + $0x20] sm:$0xff]  ;;  %v320_v11 = vld [vmem:[%s3572_s1 + $0x30] sm:$0xff]  ;;  %v323_v12 = vld [vmem:[%s3572_s1 + $0x48] sm:$0xff] }
  0x10   : > { %1893 = vmatprep.subr.bf16.mxu0 %v1892_v3  ;;  %v325_v13 = vld [vmem:[%s3572_s1 + $0x58] sm:$0xff]  ;;  %2036 = vmatprep.subr.bf16.mxu1 %v1892_v3  ;;  %v1898_v14 = vpack.c.bf16 %v320_v11, %v318_v10  ;;  %v322_v16 = vld [vmem:[%s3572_s1 + $0x40] sm:$0xff]  ;;  %v324_v17 = vld [vmem:[%s3572_s1 + $0x50] sm:$0xff]  ;;  %s3634_s28 = smov (!%p271_p3, %s1885_s28), 63 }
  0x11   : > { %1895 = vmatpush1.bf16.msra.mxu0 %v1894_v8  ;;  %2044 = vmatpush1.bf16.msra.mxu1 %v1894_v8  ;;  %v1900_v15 = vpack.c.bf16 %v325_v13, %v323_v12  ;;  %v327_v18 = vld [vmem:[%s3572_s1 + $0x68] sm:$0xff]  ;;  %v329_v19 = vld [vmem:[%s3572_s1 + $0x78] sm:$0xff]  ;;  %v1902_v20 = vpack.c.bf16 %v324_v17, %v322_v16  ;;  %v326_v22 = vld [vmem:[%s3572_s1 + $0x60] sm:$0xff]  ;;  %s1886_s27 = sshll.u32 %s3634_s28, 3 }
  0x12   : > { %1897 = vmatprep.subr.bf16.mxu0 %v1896_v9  ;;  %2037 = vmatprep.subr.bf16.mxu1 %v1896_v9  ;;  %v1904_v21 = vpack.c.bf16 %v329_v19, %v327_v18  ;;  %v328_v23 = vld [vmem:[%s3572_s1 + $0x70] sm:$0xff]  ;;  %v331_v24 = vld [vmem:[%s3572_s1 + $0x88] sm:$0xff]  ;;  %v333_v25 = vld [vmem:[%s3572_s1 + $0x98] sm:$0xff]  ;;  %s2362_s12 = scalar_lea.vmem %s3571_s0, %s1886_s27  ;;  %s3406_s14 = scalar_lea.vmem %s3578_s7, %s1886_s27 }
  0x13   : > { %v1906_v26 = vpack.c.bf16 %v328_v23, %v326_v22  ;;  %v1908_v27 = vpack.c.bf16 %v333_v25, %v331_v24  ;;  %v330_v28 = vld [vmem:[%s3572_s1 + $0x80] sm:$0xff]  ;;  %v332_v29 = vld [vmem:[%s3572_s1 + $0x90] sm:$0xff]  ;;  %v335_v30 = vld [vmem:[%s3572_s1 + $0xa8] sm:$0xff] }
  0x14   : > { %v337_v31 = vld [vmem:[%s3572_s1 + $0xb8] sm:$0xff]  ;;  %v1910_v32 = vpack.c.bf16 %v332_v29, %v330_v28  ;;  %v334_v34 = vld [vmem:[%s3572_s1 + $0xa0] sm:$0xff]  ;;  %v336_v35 = vld [vmem:[%s3572_s1 + $0xb0] sm:$0xff] }
  0x15   : > { %1899 = vmatpush1.bf16.msra.mxu0 %v1898_v14  ;;  %2045 = vmatpush1.bf16.msra.mxu1 %v1898_v14  ;;  %v1912_v33 = vpack.c.bf16 %v337_v31, %v335_v30  ;;  %v339_v36 = vld [vmem:[%s3572_s1 + $0xc8] sm:$0xff]  ;;  %v341_v37 = vld [vmem:[%s3572_s1 + $0xd8] sm:$0xff]  ;;  %v1914_v38 = vpack.c.bf16 %v336_v35, %v334_v34  ;;  %v338_v40 = vld [vmem:[%s3572_s1 + $0xc0] sm:$0xff] }
  0x16   : > { %1901 = vmatprep.subr.bf16.mxu0 %v1900_v15  ;;  %2038 = vmatprep.subr.bf16.mxu1 %v1900_v15  ;;  %v1916_v39 = vpack.c.bf16 %v341_v37, %v339_v36  ;;  %v340_v41 = vld [vmem:[%s3572_s1 + $0xd0] sm:$0xff]  ;;  %v343_v42 = vld [vmem:[%s3572_s1 + $0xe8] sm:$0xff]  ;;  %v345_v43 = vld [vmem:[%s3572_s1 + $0xf8] sm:$0xff] }
  0x17   : > { %v1918_v44 = vpack.c.bf16 %v340_v41, %v338_v40  ;;  %v1920_v45 = vpack.c.bf16 %v345_v43, %v343_v42  ;;  %v342_v46 = vld [vmem:[%s3572_s1 + $0xe0] sm:$0xff]  ;;  %v344_v47 = vld [vmem:[%s3572_s1 + $0xf0] sm:$0xff]  ;;  %v680_v48 = vld [vmem:[%s3574_s3 + $0x8] sm:$0xff] }
  0x18   : > { %v682_v49 = vld [vmem:[%s3574_s3 + $0x18] sm:$0xff]  ;;  %v1922_v50 = vpack.c.bf16 %v344_v47, %v342_v46  ;;  %v679_v52 = vld [vmem:[%s3574_s3] sm:$0xff]  ;;  %v681_v53 = vld [vmem:[%s3574_s3 + $0x10] sm:$0xff] }
  0x19   : > { %1903 = vmatpush1.bf16.msra.mxu0 %v1902_v20  ;;  %2046 = vmatpush1.bf16.msra.mxu1 %v1902_v20  ;;  %v1924_v51 = vpack.c.bf16 %v682_v49, %v680_v48  ;;  %v684_v54 = vld [vmem:[%s3574_s3 + $0x28] sm:$0xff]  ;;  %v686_v55 = vld [vmem:[%s3574_s3 + $0x38] sm:$0xff]  ;;  %v282_v56 = vld [vmem:[%s2362_s12] sm:$0xff]  ;;  %v1926_v58 = vpack.c.bf16 %v681_v53, %v679_v52 }
  0x1a   : > { %1905 = vmatprep.subr.bf16.mxu0 %v1904_v21  ;;  %2039 = vmatprep.subr.bf16.mxu1 %v1904_v21  ;;  %v298_v57 = vld [vmem:[%s2362_s12 + $0x80] sm:$0xff]  ;;  %v1928_v59 = vpack.c.bf16 %v686_v55, %v684_v54  ;;  %v685_v61 = vld [vmem:[%s3574_s3 + $0x30] sm:$0xff]  ;;  %v688_v62 = vld [vmem:[%s3574_s3 + $0x48] sm:$0xff] }
  0x1b   : > { %v683_v60 = vld [vmem:[%s3574_s3 + $0x20] sm:$0xff]  ;;  %v690_v63 = vld [vmem:[%s3574_s3 + $0x58] sm:$0xff]  ;;  %v283_v0 = vld [vmem:[%s2362_s12 + $0x8] sm:$0xff] }
  0x1c   : > { %v299_v1 = vld [vmem:[%s2362_s12 + $0x88] sm:$0xff]  ;;  %v1930_v2 = vpack.c.bf16 %v685_v61, %v683_v60  ;;  %v1932_v3 = vpack.c.bf16 %v690_v63, %v688_v62  ;;  %v687_v4 = vld [vmem:[%s3574_s3 + $0x40] sm:$0xff]  ;;  %v689_v5 = vld [vmem:[%s3574_s3 + $0x50] sm:$0xff] }
  0x1d   : > { %1907 = vmatpush1.bf16.msra.mxu0 %v1906_v26  ;;  %2047 = vmatpush1.bf16.msra.mxu1 %v1906_v26  ;;  %v692_v6 = vld [vmem:[%s3574_s3 + $0x68] sm:$0xff]  ;;  %v694_v8 = vld [vmem:[%s3574_s3 + $0x78] sm:$0xff]  ;;  %v284_v9 = vld [vmem:[%s2362_s12 + $0x10] sm:$0xff]  ;;  %v1934_v11 = vpack.c.bf16 %v689_v5, %v687_v4 }
  0x1e   : > { %1909 = vmatprep.subr.bf16.mxu0 %v1908_v27  ;;  %2040 = vmatprep.subr.bf16.mxu1 %v1908_v27  ;;  %v300_v10 = vld [vmem:[%s2362_s12 + $0x90] sm:$0xff]  ;;  %v1936_v12 = vpack.c.bf16 %v694_v8, %v692_v6  ;;  %v691_v13 = vld [vmem:[%s3574_s3 + $0x60] sm:$0xff]  ;;  %v696_v15 = vld [vmem:[%s3574_s3 + $0x88] sm:$0xff] }
  0x1f   : > { %v693_v14 = vld [vmem:[%s3574_s3 + $0x70] sm:$0xff]  ;;  %v698_v16 = vld [vmem:[%s3574_s3 + $0x98] sm:$0xff]  ;;  %v695_v21 = vld [vmem:[%s3574_s3 + $0x80] sm:$0xff] }
  0x20   : > { %v285_v17 = vld [vmem:[%s2362_s12 + $0x18] sm:$0xff]  ;;  %v1938_v19 = vpack.c.bf16 %v693_v14, %v691_v13  ;;  %v1940_v20 = vpack.c.bf16 %v698_v16, %v696_v15  ;;  %v697_v22 = vld [vmem:[%s3574_s3 + $0x90] sm:$0xff]  ;;  %v700_v23 = vld [vmem:[%s3574_s3 + $0xa8] sm:$0xff] }
  0x21   : > { %1911 = vmatpush1.bf16.msra.mxu0 %v1910_v32  ;;  %2048 = vmatpush1.bf16.msra.mxu1 %v1910_v32  ;;  %v301_v18 = vld [vmem:[%s2362_s12 + $0x98] sm:$0xff]  ;;  %v286_v25 = vld [vmem:[%s2362_s12 + $0x20] sm:$0xff]  ;;  %v1942_v27 = vpack.c.bf16 %v697_v22, %v695_v21  ;;  %v701_v30 = vld [vmem:[%s3574_s3 + $0xb0] sm:$0xff] }
  0x22   : > { %1913 = vmatprep.subr.bf16.mxu0 %v1912_v33  ;;  %2041 = vmatprep.subr.bf16.mxu1 %v1912_v33  ;;  %v702_v24 = vld [vmem:[%s3574_s3 + $0xb8] sm:$0xff]  ;;  %v302_v26 = vld [vmem:[%s2362_s12 + $0xa0] sm:$0xff]  ;;  %v704_v31 = vld [vmem:[%s3574_s3 + $0xc8] sm:$0xff] }
  0x23   : > { %v1944_v28 = vpack.c.bf16 %v702_v24, %v700_v23  ;;  %v699_v29 = vld [vmem:[%s3574_s3 + $0xa0] sm:$0xff]  ;;  %v706_v32 = vld [vmem:[%s3574_s3 + $0xd8] sm:$0xff]  ;;  %v287_v33 = vld [vmem:[%s2362_s12 + $0x28] sm:$0xff] }
  0x24   : > { %v303_v34 = vld [vmem:[%s2362_s12 + $0xa8] sm:$0xff]  ;;  %v1946_v35 = vpack.c.bf16 %v701_v30, %v699_v29  ;;  %v1948_v36 = vpack.c.bf16 %v706_v32, %v704_v31  ;;  %v703_v37 = vld [vmem:[%s3574_s3 + $0xc0] sm:$0xff]  ;;  %v710_v40 = vld [vmem:[%s3574_s3 + $0xf8] sm:$0xff] }
  0x25   : > { %1915 = vmatpush1.bf16.msra.mxu0 %v1914_v38  ;;  %2049 = vmatpush1.bf16.msra.mxu1 %v1914_v38  ;;  %v705_v38 = vld [vmem:[%s3574_s3 + $0xd0] sm:$0xff]  ;;  %v712_v47 = vld [vmem:[%s3574_s3 + $0x108] sm:$0xff]  ;;  %v714_v48 = vld [vmem:[%s3574_s3 + $0x118] sm:$0xff] }
  0x26   : > { %1917 = vmatprep.subr.bf16.mxu0 %v1916_v39  ;;  %2042 = vmatprep.subr.bf16.mxu1 %v1916_v39  ;;  %v708_v39 = vld [vmem:[%s3574_s3 + $0xe8] sm:$0xff]  ;;  %v288_v41 = vld [vmem:[%s2362_s12 + $0x30] sm:$0xff]  ;;  %v1950_v43 = vpack.c.bf16 %v705_v38, %v703_v37  ;;  %v289_v49 = vld [vmem:[%s2362_s12 + $0x38] sm:$0xff]  ;;  %v1956_v52 = vpack.c.bf16 %v714_v48, %v712_v47 }
  0x27   : > { %v304_v42 = vld [vmem:[%s2362_s12 + $0xb0] sm:$0xff]  ;;  %v711_v53 = vld [vmem:[%s3574_s3 + $0x100] sm:$0xff]  ;;  %v716_v55 = vld [vmem:[%s3574_s3 + $0x128] sm:$0xff] }
  0x28   : > { %v709_v46 = vld [vmem:[%s3574_s3 + $0xf0] sm:$0xff]  ;;  %v715_v61 = vld [vmem:[%s3574_s3 + $0x120] sm:$0xff]  ;;  %v720_v63 = vld [vmem:[%s3574_s3 + $0x148] sm:$0xff] }
  0x29   : > { %1919 = vmatpush1.bf16.msra.mxu0 %v1918_v44  ;;  %2050 = vmatpush1.bf16.msra.mxu1 %v1918_v44  ;;  %v1952_v44 = vpack.c.bf16 %v710_v40, %v708_v39  ;;  %v713_v54 = vld [vmem:[%s3574_s3 + $0x110] sm:$0xff]  ;;  %v719_v5 = vld [vmem:[%s3574_s3 + $0x140] sm:$0xff]  ;;  %v724_v8 = vld [vmem:[%s3574_s3 + $0x168] sm:$0xff] }
  0x2a   : > { %1921 = vmatprep.subr.bf16.mxu0 %v1920_v45  ;;  %2043 = vmatprep.subr.bf16.mxu1 %v1920_v45  ;;  %v707_v45 = vld [vmem:[%s3574_s3 + $0xe0] sm:$0xff]  ;;  %v717_v62 = vld [vmem:[%s3574_s3 + $0x130] sm:$0xff]  ;;  %v728_v16 = vld [vmem:[%s3574_s3 + $0x188] sm:$0xff] }
  0x2b   : > { %v721_v6 = vld [vmem:[%s3574_s3 + $0x150] sm:$0xff]  ;;  %v723_v14 = vld [vmem:[%s3574_s3 + $0x160] sm:$0xff]  ;;  %v732_v24 = vld [vmem:[%s3574_s3 + $0x1a8] sm:$0xff] }
  0x2c   : > { %v725_v15 = vld [vmem:[%s3574_s3 + $0x170] sm:$0xff]  ;;  %v727_v22 = vld [vmem:[%s3574_s3 + $0x180] sm:$0xff]  ;;  %v736_v32 = vld [vmem:[%s3574_s3 + $0x1c8] sm:$0xff] }
  0x2d   : > { %1923 = vmatpush1.bf16.msra.mxu0 %v1922_v50  ;;  %2051 = vmatpush1.bf16.msra.mxu1 %v1922_v50  ;;  %v305_v50 = vld [vmem:[%s2362_s12 + $0xb8] sm:$0xff]  ;;  %v729_v23 = vld [vmem:[%s3574_s3 + $0x190] sm:$0xff]  ;;  %v731_v30 = vld [vmem:[%s3574_s3 + $0x1a0] sm:$0xff] }
  0x2e   : > { %1925 = vmatprep.subr.bf16.mxu1 %v1924_v51  ;;  %v1954_v51 = vpack.c.bf16 %v709_v46, %v707_v45  ;;  %v733_v31 = vld [vmem:[%s3574_s3 + $0x1b0] sm:$0xff]  ;;  %v735_v38 = vld [vmem:[%s3574_s3 + $0x1c0] sm:$0xff]  ;;  %v740_v45 = vld [vmem:[%s3574_s3 + $0x1e8] sm:$0xff] }
  0x2f   : > { %v737_v39 = vld [vmem:[%s3574_s3 + $0x1d0] sm:$0xff]  ;;  %v742_v46 = vld [vmem:[%s3574_s3 + $0x1f8] sm:$0xff]  ;;  %v739_v48 = vld [vmem:[%s3574_s3 + $0x1e0] sm:$0xff] }
  0x30   : > { %423 = vmatmul.mubr.f32.vlgmr.msra.gmra.mrb[0].mxu0 %v282_v56  ;;  %519 = vmatmul.mubr.f32.vlgmr.msra.gmra.mrb[0].mxu1 %v298_v57  ;;  %v718_v56 = vld [vmem:[%s3574_s3 + $0x138] sm:$0xff]  ;;  %v290_v57 = vld [vmem:[%s2362_s12 + $0x40] sm:$0xff]  ;;  %v296_v40 = vld [vmem:[%s2362_s12 + $0x70] sm:$0xff]  ;;  %v1984_v47 = vpack.c.bf16 %v742_v46, %v740_v45 }
  0x31   : > { %428 = vmatprep.mubr.f32.mxu0 %v2198_v7  ;;  %524 = vmatprep.mubr.f32.mxu1 %v2198_v7  ;;  %v1960_v60 = vpack.c.bf16 %v718_v56, %v716_v55  ;;  %v1085_v45 = vld [vmem:[%s3576_s5 + $0x48] sm:$0xff] }
  0x32   : > { %1927 = vmatpush1.bf16.msra.mxu1 %v1926_v58  ;;  %v306_v58 = vld [vmem:[%s2362_s12 + $0xc0] sm:$0xff] }
  0x33   : > { %1929 = vmatprep.subr.bf16.mxu1 %v1928_v59  ;;  %v1958_v59 = vpack.c.bf16 %v713_v54, %v711_v53  ;;  %v346_v53 = vld [vmem:[%s3573_s2] sm:$0x3] }
  0x34   : > { %429 = vmatmul.mubr.f32.gmra.mrb[2].mxu0 %v283_v0  ;;  %525 = vmatmul.mubr.f32.gmra.mrb[2].mxu1 %v299_v1  ;;  %v722_v0 = vld [vmem:[%s3574_s3 + $0x158] sm:$0xff]  ;;  %v291_v1 = vld [vmem:[%s2362_s12 + $0x48] sm:$0xff] }
  0x35   : > { %434 = vmatprep.mubr.f32.mxu0 %v2198_v7  ;;  %530 = vmatprep.mubr.f32.mxu1 %v2198_v7  ;;  %v1964_v4 = vpack.c.bf16 %v722_v0, %v720_v63  ;;  %v1076_v0 = vld [vmem:[%s3576_s5] sm:$0xff] }
  0x36   : > { %1931 = vmatpush1.bf16.msra.mxu1 %v1930_v2  ;;  %v307_v2 = vld [vmem:[%s2362_s12 + $0xc8] sm:$0xff] }
  0x37   : > { %1933 = vmatprep.subr.bf16.mxu1 %v1932_v3  ;;  %v1962_v3 = vpack.c.bf16 %v717_v62, %v715_v61 }
  0x38   : > { %435 = vmatmul.mubr.f32.gmra.mrb[4].mxu0 %v284_v9  ;;  %531 = vmatmul.mubr.f32.gmra.mrb[4].mxu1 %v300_v10  ;;  %v726_v9 = vld [vmem:[%s3574_s3 + $0x178] sm:$0xff]  ;;  %v292_v10 = vld [vmem:[%s2362_s12 + $0x50] sm:$0xff] }
  0x39   : > { %440 = vmatprep.mubr.f32.mxu0 %v2198_v7  ;;  %536 = vmatprep.mubr.f32.mxu1 %v2198_v7  ;;  %v1968_v13 = vpack.c.bf16 %v726_v9, %v724_v8  ;;  %v1079_v9 = vld [vmem:[%s3576_s5 + $0x18] sm:$0xff] }
  0x3a   : > { %1935 = vmatpush1.bf16.msra.mxu1 %v1934_v11  ;;  %v308_v11 = vld [vmem:[%s2362_s12 + $0xd0] sm:$0xff] }
  0x3b   : > { %1937 = vmatprep.subr.bf16.mxu1 %v1936_v12  ;;  %v1966_v12 = vpack.c.bf16 %v721_v6, %v719_v5  ;;  %v2199_v6 = vmov 0.0|0.0  }
  0x3c   : > { %441 = vmatmul.mubr.f32.gmra.mrb[6].mxu0 %v285_v17  ;;  %537 = vmatmul.mubr.f32.gmra.mrb[6].mxu1 %v301_v18  ;;  %v730_v17 = vld [vmem:[%s3574_s3 + $0x198] sm:$0xff] }
  0x3d   : > { %446 = vmatprep.mubr.f32.mxu0 %v2198_v7  ;;  %542 = vmatprep.mubr.f32.mxu1 %v2198_v7  ;;  %v293_v18 = vld [vmem:[%s2362_s12 + $0x58] sm:$0xff]  ;;  %v1972_v21 = vpack.c.bf16 %v730_v17, %v728_v16 }
  0x3e   : > { %1939 = vmatpush1.bf16.msra.mxu1 %v1938_v19  ;;  %v309_v19 = vld [vmem:[%s2362_s12 + $0xd8] sm:$0xff]  ;;  %1988 = vmatprep.subr.bf16.mxu0 %v2199_v6 }
  0x3f   : > { %1941 = vmatprep.subr.bf16.mxu1 %v1940_v20  ;;  %v1970_v20 = vpack.c.bf16 %v725_v15, %v723_v14 }
  0x40   : > { %447 = vmatmul.mubr.f32.gmra.mrb[8].mxu0 %v286_v25  ;;  %543 = vmatmul.mubr.f32.gmra.mrb[8].mxu1 %v302_v26  ;;  %v734_v25 = vld [vmem:[%s3574_s3 + $0x1b8] sm:$0xff]  ;;  %v294_v26 = vld [vmem:[%s2362_s12 + $0x60] sm:$0xff] }
  0x41   : > { %452 = vmatprep.mubr.f32.mxu0 %v2198_v7  ;;  %548 = vmatprep.mubr.f32.mxu1 %v2198_v7  ;;  %v1976_v29 = vpack.c.bf16 %v734_v25, %v732_v24 }
  0x42   : > { %1943 = vmatpush1.bf16.msra.mxu1 %v1942_v27  ;;  %v310_v27 = vld [vmem:[%s2362_s12 + $0xe0] sm:$0xff] }
  0x43   : > { %1945 = vmatprep.subr.bf16.mxu1 %v1944_v28  ;;  %v1974_v28 = vpack.c.bf16 %v729_v23, %v727_v22 }
  0x44   : > { %453 = vmatmul.mubr.f32.gmra.mrb[10].mxu0 %v287_v33  ;;  %549 = vmatmul.mubr.f32.gmra.mrb[10].mxu1 %v303_v34  ;;  %v738_v33 = vld [vmem:[%s3574_s3 + $0x1d8] sm:$0xff]  ;;  %v295_v34 = vld [vmem:[%s2362_s12 + $0x68] sm:$0xff] }
  0x45   : > { %458 = vmatprep.mubr.f32.mxu0 %v2198_v7  ;;  %554 = vmatprep.mubr.f32.mxu1 %v2198_v7  ;;  %v1980_v37 = vpack.c.bf16 %v738_v33, %v736_v32  ;;  %v1083_v32 = vld [vmem:[%s3576_s5 + $0x38] sm:$0xff] }
  0x46   : > { %1947 = vmatpush1.bf16.msra.mxu1 %v1946_v35  ;;  %v311_v35 = vld [vmem:[%s2362_s12 + $0xe8] sm:$0xff] }
  0x47   : > { %1949 = vmatprep.subr.bf16.mxu1 %v1948_v36  ;;  %v1978_v36 = vpack.c.bf16 %v733_v31, %v731_v30  ;;  %v1082_v31 = vld [vmem:[%s3576_s5 + $0x30] sm:$0xff] }
  0x48   : > { %459 = vmatmul.mubr.f32.gmra.mrb[12].mxu0 %v288_v41  ;;  %555 = vmatmul.mubr.f32.gmra.mrb[12].mxu1 %v304_v42  ;;  %v312_v41 = vld [vmem:[%s2362_s12 + $0xf0] sm:$0xff]  ;;  %v1982_v42 = vpack.c.bf16 %v737_v39, %v735_v38 }
  0x49   : > { %464 = vmatprep.mubr.f32.mxu0 %v2198_v7  ;;  %560 = vmatprep.mubr.f32.mxu1 %v2198_v7 }
  0x4a   : > { %1951 = vmatpush1.bf16.msra.mxu1 %v1950_v43  ;;  %v297_v43 = vld [vmem:[%s2362_s12 + $0x78] sm:$0xff] }
  0x4b   : > { %1953 = vmatprep.subr.bf16.mxu1 %v1952_v44  ;;  %v313_v44 = vld [vmem:[%s2362_s12 + $0xf8] sm:$0xff] }
  0x4c   : > { %465 = vmatmul.mubr.f32.gmra.mrb[14].mxu0 %v289_v49  ;;  %561 = vmatmul.mubr.f32.gmra.mrb[14].mxu1 %v305_v50  ;;  %v348_v50 = vlaneseq }
  0x4d   : > { %470 = vmatprep.mubr.f32.mxu0 %v2198_v7  ;;  %566 = vmatprep.mubr.f32.mxu1 %v2198_v7 }
  0x4e   : > { %1955 = vmatpush1.bf16.msra.mxu1 %v1954_v51  ;;  %v2613_v51 = vshrl.u32 %v348_v50, 7 }
  0x4f   : > { %1957 = vmatprep.subr.bf16.mxu1 %v1956_v52 }
  0x50   : > { %471 = vmatmul.mubr.f32.gmra.mrb[16].mxu0 %v290_v57  ;;  %567 = vmatmul.mubr.f32.gmra.mrb[16].mxu1 %v306_v58  ;;  %v350_v52 = vsub.s32 0, %v2613_v51  ;;  %v354_v54 = vsub.s32 1, %v2613_v51 }
  0x51   : > { %476 = vmatprep.mubr.f32.mxu0 %v2198_v7  ;;  %572 = vmatprep.mubr.f32.mxu1 %v2198_v7 }
  0x52   : > { %1959 = vmatpush1.bf16.msra.mxu1 %v1958_v59  ;;  %v2622_v55 = vrot.slane %v346_v53, %v350_v52  ;;  %v2626_v56 = vrot.slane %v346_v53, %v354_v54 }
  0x53   : > { %1961 = vmatprep.subr.bf16.mxu1 %v1960_v60 }
  0x54   : > { %477 = vmatmul.mubr.f32.gmra.mrb[18].mxu0 %v291_v1  ;;  %573 = vmatmul.mubr.f32.gmra.mrb[18].mxu1 %v307_v2  ;;  %v1077_v1 = vld [vmem:[%s3576_s5 + $0x8] sm:$0xff]  ;;  %v1078_v2 = vld [vmem:[%s3576_s5 + $0x10] sm:$0xff] }
  0x55   : > { %482 = vmatprep.mubr.f32.mxu0 %v2198_v7  ;;  %578 = vmatprep.mubr.f32.mxu1 %v2198_v7  ;;  %v1989_v8 = vpack.c.bf16 %v1077_v1, %v1076_v0  ;;  %v1992_v17 = vpack.c.bf16 %v1079_v9, %v1078_v2  ;;  %v1086_v0 = vld [vmem:[%s3576_s5 + $0x50] sm:$0xff]  ;;  %v1087_v1 = vld [vmem:[%s3576_s5 + $0x58] sm:$0xff] }
  0x56   : > { %1963 = vmatpush1.bf16.msra.mxu1 %v1962_v3 }
  0x57   : > { %1965 = vmatprep.subr.bf16.mxu1 %v1964_v4  ;;  %1990 = vmatpush1.bf16.msra.mxu0 %v1989_v8 }
  0x58   : > { %483 = vmatmul.mubr.f32.gmra.mrb[20].mxu0 %v292_v10  ;;  %579 = vmatmul.mubr.f32.gmra.mrb[20].mxu1 %v308_v11 }
  0x59   : > { %488 = vmatprep.mubr.f32.mxu0 %v2198_v7  ;;  %584 = vmatprep.mubr.f32.mxu1 %v2198_v7 }
  0x5a   : > { %1967 = vmatpush1.bf16.msra.mxu1 %v1966_v12  ;;  %1991 = vmatprep.subr.bf16.mxu0 %v2199_v6 }
  0x5b   : > { %1969 = vmatprep.subr.bf16.mxu1 %v1968_v13  ;;  %1993 = vmatpush1.bf16.msra.mxu0 %v1992_v17  ;;  %v1088_v17 = vld [vmem:[%s3576_s5 + $0x60] sm:$0xff] }
  0x5c   : > { %489 = vmatmul.mubr.f32.gmra.mrb[22].mxu0 %v293_v18  ;;  %585 = vmatmul.mubr.f32.gmra.mrb[22].mxu1 %v309_v19  ;;  %v1080_v18 = vld [vmem:[%s3576_s5 + $0x20] sm:$0xff]  ;;  %v1081_v19 = vld [vmem:[%s3576_s5 + $0x28] sm:$0xff] }
  0x5d   : > { %494 = vmatprep.mubr.f32.mxu0 %v2198_v7  ;;  %590 = vmatprep.mubr.f32.mxu1 %v2198_v7  ;;  %v1995_v30 = vpack.c.bf16 %v1081_v19, %v1080_v18  ;;  %v1089_v18 = vld [vmem:[%s3576_s5 + $0x68] sm:$0xff] }
  0x5e   : > { %1971 = vmatpush1.bf16.msra.mxu1 %v1970_v20  ;;  %1994 = vmatprep.subr.bf16.mxu0 %v2199_v6 }
  0x5f   : > { %1973 = vmatprep.subr.bf16.mxu1 %v1972_v21  ;;  %1996 = vmatpush1.bf16.msra.mxu0 %v1995_v30 }
  0x60   : > { %495 = vmatmul.mubr.f32.gmra.mrb[24].mxu0 %v294_v26  ;;  %591 = vmatmul.mubr.f32.gmra.mrb[24].mxu1 %v310_v27 }
  0x61   : > { %500 = vmatprep.mubr.f32.mxu0 %v2198_v7  ;;  %596 = vmatprep.mubr.f32.mxu1 %v2198_v7 }
  0x62   : > { %1975 = vmatpush1.bf16.msra.mxu1 %v1974_v28  ;;  %1997 = vmatprep.subr.bf16.mxu0 %v2199_v6 }
  0x63   : > { %1977 = vmatprep.subr.bf16.mxu1 %v1976_v29 }
  0x64   : > { %501 = vmatmul.mubr.f32.gmra.mrb[26].mxu0 %v295_v34  ;;  %597 = vmatmul.mubr.f32.gmra.mrb[26].mxu1 %v311_v35 }
  0x65   : > { %506 = vmatprep.mubr.f32.mxu0 %v2198_v7  ;;  %602 = vmatprep.mubr.f32.mxu1 %v2198_v7 }
  0x66   : > { %1979 = vmatpush1.bf16.msra.mxu1 %v1978_v36 }
  0x67   : > { %1981 = vmatprep.subr.bf16.mxu1 %v1980_v37 }
  0x68   : > { %507 = vmatmul.mubr.f32.gmra.mrb[28].mxu0 %v296_v40  ;;  %603 = vmatmul.mubr.f32.gmra.mrb[28].mxu1 %v312_v41 }
  0x69   : > { %512 = vmatprep.mubr.f32.mxu0 %v2198_v7  ;;  %608 = vmatprep.mubr.f32.mxu1 %v2198_v7  ;;  %v741_v7 = vld [vmem:[%s3574_s3 + $0x1f0] sm:$0xff] }
  0x6a   : > { %1983 = vmatpush1.bf16.msra.mxu1 %v1982_v42  ;;  %v1986_v49 = vpack.c.bf16 %v741_v7, %v739_v48 }
  0x6b   : > { %1985 = vmatprep.subr.bf16.mxu1 %v1984_v47 }
  0x6c   : > { %513 = vmatmul.mubr.f32.gmra.mrb[30].mxu0 %v297_v43  ;;  %609 = vmatmul.mubr.f32.gmra.mrb[30].mxu1 %v313_v44  ;;  %v1998_v43 = vpack.c.bf16 %v1083_v32, %v1082_v31  ;;  %v1084_v44 = vld [vmem:[%s3576_s5 + $0x40] sm:$0xff]  ;;  %v2007_v31 = vpack.c.bf16 %v1089_v18, %v1088_v17  ;;  %v1090_v32 = vld [vmem:[%s3576_s5 + $0x70] sm:$0xff] }
  0x6e   : > { %1987 = vmatpush1.bf16.msra.mxu1 %v1986_v49  ;;  %1999 = vmatpush1.bf16.msra.mxu0 %v1998_v43 }
  0x6f   : > { %2000 = vmatprep.subr.bf16.mxu0 %v2199_v6 }
 0x103   : > { %v424_v57 = vpop.f32.mrb[0].mxu0  ;;  %v520_v58 = vpop.f32.mrb[0].mxu1 }
 0x104   : > { %v425_v59 = vadd.f32 %v424_v57, %v2622_v55  ;;  %v426_v60 = vpop.f32.mrb[1].mxu0  ;;  %v2630_v61 = vadd.f32 %v520_v58, %v2622_v55  ;;  %v2632_v62 = vpop.f32.mrb[1].mxu1 }
 0x105   : > { %v427_v63 = vadd.f32 %v426_v60, %v2626_v56 }
 0x106   : > { %v615_v10 = vmax.f32 %v425_v59, 0.0 }
 0x107   : > { %v616_v3 = vmax.f32 %v427_v63, 0.0  ;;  %v430_v4 = vpop.f32.mrb[2].mxu0  ;;  %v526_v5 = vpop.f32.mrb[2].mxu1  ;;  %v2001_v63 = vpack.c.bf16 %v1085_v45, %v1084_v44 }
 0x108   : > { %v431_v11 = vadd.f32 %v430_v4, %v2622_v55  ;;  %v432_v12 = vpop.f32.mrb[3].mxu0  ;;  %v2650_v13 = vadd.f32 %v526_v5, %v2622_v55  ;;  %v528_v14 = vpop.f32.mrb[3].mxu1 }
 0x109   : > { %v433_v15 = vadd.f32 %v432_v12, %v2626_v56  ;;  %819 = vmatprep.mubr.f32.mxu1 %v616_v3  ;;  %v2654_v16 = vadd.f32 %v528_v14, %v2626_v56  ;;  %2002 = vmatpush1.bf16.msra.mxu0 %v2001_v63 }
 0x10a   : > { %820 = vmatmul.mubr.f32.vlgmr.msra.gmra.mrb[32].mxu1 %v615_v10  ;;  %v617_v23 = vmax.f32 %v431_v11, 0.0  ;;  %2003 = vmatprep.subr.bf16.mxu0 %v2199_v6 }
 0x10b   : > { %v618_v20 = vmax.f32 %v433_v15, 0.0  ;;  %v436_v21 = vpop.f32.mrb[4].mxu0  ;;  %v532_v22 = vpop.f32.mrb[4].mxu1  ;;  %v2004_v15 = vpack.c.bf16 %v1087_v1, %v1086_v0 }
 0x10c   : > { %v437_v24 = vadd.f32 %v436_v21, %v2622_v55  ;;  %v438_v25 = vpop.f32.mrb[5].mxu0  ;;  %v2665_v26 = vadd.f32 %v532_v22, %v2622_v55  ;;  %v534_v27 = vpop.f32.mrb[5].mxu1 }
 0x10d   : > { %v439_v28 = vadd.f32 %v438_v25, %v2626_v56  ;;  %825 = vmatprep.mubr.f32.mxu1 %v618_v20  ;;  %v2669_v29 = vadd.f32 %v534_v27, %v2626_v56  ;;  %2005 = vmatpush1.bf16.msra.mxu0 %v2004_v15 }
 0x10e   : > { %826 = vmatmul.mubr.f32.gmra.mrb[34].mxu1 %v617_v23  ;;  %v619_v36 = vmax.f32 %v437_v24, 0.0  ;;  %2006 = vmatprep.subr.bf16.mxu0 %v2199_v6 }
 0x10f   : > { %v620_v33 = vmax.f32 %v439_v28, 0.0  ;;  %v442_v34 = vpop.f32.mrb[6].mxu0  ;;  %v538_v35 = vpop.f32.mrb[6].mxu1 }
 0x110   : > { %v443_v37 = vadd.f32 %v442_v34, %v2622_v55  ;;  %v444_v38 = vpop.f32.mrb[7].mxu0  ;;  %v2680_v39 = vadd.f32 %v538_v35, %v2622_v55  ;;  %v540_v40 = vpop.f32.mrb[7].mxu1 }
 0x111   : > { %v445_v41 = vadd.f32 %v444_v38, %v2626_v56  ;;  %831 = vmatprep.mubr.f32.mxu1 %v620_v33  ;;  %v2684_v42 = vadd.f32 %v540_v40, %v2626_v56  ;;  %v1091_v33 = vld [vmem:[%s3576_s5 + $0x78] sm:$0xff]  ;;  %2008 = vmatpush1.bf16.msra.mxu0 %v2007_v31 }
 0x112   : > { %832 = vmatmul.mubr.f32.gmra.mrb[36].mxu1 %v619_v36  ;;  %v621_v7 = vmax.f32 %v443_v37, 0.0  ;;  %2009 = vmatprep.subr.bf16.mxu0 %v2199_v6 }
 0x113   : > { %v622_v46 = vmax.f32 %v445_v41, 0.0  ;;  %v448_v47 = vpop.f32.mrb[8].mxu0  ;;  %v544_v48 = vpop.f32.mrb[8].mxu1 }
 0x114   : > { %v449_v49 = vadd.f32 %v448_v47, %v2622_v55  ;;  %v450_v53 = vpop.f32.mrb[9].mxu0  ;;  %v2695_v57 = vadd.f32 %v544_v48, %v2622_v55  ;;  %v546_v58 = vpop.f32.mrb[9].mxu1  ;;  %v1092_v47 = vld [vmem:[%s3576_s5 + $0x80] sm:$0xff]  ;;  %v1093_v48 = vld [vmem:[%s3576_s5 + $0x88] sm:$0xff] }
 0x115   : > { %v451_v59 = vadd.f32 %v450_v53, %v2626_v56  ;;  %837 = vmatprep.mubr.f32.mxu1 %v622_v46  ;;  %v2699_v60 = vadd.f32 %v546_v58, %v2626_v56  ;;  %v2010_v46 = vpack.c.bf16 %v1091_v33, %v1090_v32 }
 0x116   : > { %838 = vmatmul.mubr.f32.gmra.mrb[38].mxu1 %v621_v7  ;;  %v623_v5 = vmax.f32 %v449_v49, 0.0 }
 0x117   : > { %v624_v2 = vmax.f32 %v451_v59, 0.0  ;;  %v454_v3 = vpop.f32.mrb[10].mxu0  ;;  %v550_v4 = vpop.f32.mrb[10].mxu1  ;;  %2011 = vmatpush1.bf16.msra.mxu0 %v2010_v46  ;;  %v1099_v46 = vld [vmem:[%s3576_s5 + $0xb8] sm:$0xff] }
 0x118   : > { %v455_v8 = vadd.f32 %v454_v3, %v2622_v55  ;;  %v456_v9 = vpop.f32.mrb[11].mxu0  ;;  %v2710_v10 = vadd.f32 %v550_v4, %v2622_v55  ;;  %v552_v11 = vpop.f32.mrb[11].mxu1  ;;  %v2013_v4 = vpack.c.bf16 %v1093_v48, %v1092_v47  ;;  %2012 = vmatprep.subr.bf16.mxu0 %v2199_v6 }
 0x119   : > { %v457_v12 = vadd.f32 %v456_v9, %v2626_v56  ;;  %843 = vmatprep.mubr.f32.mxu1 %v624_v2  ;;  %v2714_v14 = vadd.f32 %v552_v11, %v2626_v56 }
 0x11a   : > { %844 = vmatmul.mubr.f32.gmra.mrb[40].mxu1 %v623_v5  ;;  %v625_v22 = vmax.f32 %v455_v8, 0.0  ;;  %v1094_v5 = vld [vmem:[%s3576_s5 + $0x90] sm:$0xff]  ;;  %v1095_v8 = vld [vmem:[%s3576_s5 + $0x98] sm:$0xff] }
 0x11b   : > { %v626_v19 = vmax.f32 %v457_v12, 0.0  ;;  %v460_v20 = vpop.f32.mrb[12].mxu0  ;;  %v556_v21 = vpop.f32.mrb[12].mxu1  ;;  %2014 = vmatpush1.bf16.msra.mxu0 %v2013_v4 }
 0x11c   : > { %v461_v23 = vadd.f32 %v460_v20, %v2622_v55  ;;  %v462_v24 = vpop.f32.mrb[13].mxu0  ;;  %v2725_v25 = vadd.f32 %v556_v21, %v2622_v55  ;;  %v558_v27 = vpop.f32.mrb[13].mxu1  ;;  %2015 = vmatprep.subr.bf16.mxu0 %v2199_v6 }
 0x11d   : > { %v463_v28 = vadd.f32 %v462_v24, %v2626_v56  ;;  %849 = vmatprep.mubr.f32.mxu1 %v626_v19  ;;  %v2729_v30 = vadd.f32 %v558_v27, %v2626_v56  ;;  %v1096_v24 = vld [vmem:[%s3576_s5 + $0xa0] sm:$0xff]  ;;  %v1097_v27 = vld [vmem:[%s3576_s5 + $0xa8] sm:$0xff] }
 0x11e   : > { %850 = vmatmul.mubr.f32.gmra.mrb[42].mxu1 %v625_v22  ;;  %v627_v37 = vmax.f32 %v461_v23, 0.0  ;;  %v2016_v23 = vpack.c.bf16 %v1095_v8, %v1094_v5  ;;  %v1100_v5 = vld [vmem:[%s3576_s5 + $0xc0] sm:$0xff]  ;;  %v1101_v8 = vld [vmem:[%s3576_s5 + $0xc8] sm:$0xff] }
 0x11f   : > { %v628_v34 = vmax.f32 %v463_v28, 0.0  ;;  %v466_v35 = vpop.f32.mrb[14].mxu0  ;;  %v562_v36 = vpop.f32.mrb[14].mxu1 }
 0x120   : > { %v467_v38 = vadd.f32 %v466_v35, %v2622_v55  ;;  %v468_v40 = vpop.f32.mrb[15].mxu0  ;;  %v2740_v41 = vadd.f32 %v562_v36, %v2622_v55  ;;  %v564_v43 = vpop.f32.mrb[15].mxu1  ;;  %2017 = vmatpush1.bf16.msra.mxu0 %v2016_v23 }
 0x121   : > { %v469_v44 = vadd.f32 %v468_v40, %v2626_v56  ;;  %855 = vmatprep.mubr.f32.mxu1 %v628_v34  ;;  %v2744_v45 = vadd.f32 %v564_v43, %v2626_v56  ;;  %v2019_v43 = vpack.c.bf16 %v1097_v27, %v1096_v24  ;;  %2018 = vmatprep.subr.bf16.mxu0 %v2199_v6 }
 0x122   : > { %856 = vmatmul.mubr.f32.gmra.mrb[44].mxu1 %v627_v37  ;;  %v629_v58 = vmax.f32 %v467_v38, 0.0  ;;  %v2025_v27 = vpack.c.bf16 %v1101_v8, %v1100_v5 }
 0x123   : > { %v630_v7 = vmax.f32 %v469_v44, 0.0  ;;  %v472_v49 = vpop.f32.mrb[16].mxu0  ;;  %v568_v53 = vpop.f32.mrb[16].mxu1  ;;  %v1098_v44 = vld [vmem:[%s3576_s5 + $0xb0] sm:$0xff] }
 0x124   : > { %v473_v59 = vadd.f32 %v472_v49, %v2622_v55  ;;  %v474_v63 = vpop.f32.mrb[17].mxu0  ;;  %v2755_v0 = vadd.f32 %v568_v53, %v2622_v55  ;;  %v570_v1 = vpop.f32.mrb[17].mxu1  ;;  %2020 = vmatpush1.bf16.msra.mxu0 %v2019_v43  ;;  %v2022_v4 = vpack.c.bf16 %v1099_v46, %v1098_v44 }
 0x125   : > { %v475_v2 = vadd.f32 %v474_v63, %v2626_v56  ;;  %861 = vmatprep.mubr.f32.mxu1 %v630_v7  ;;  %v2759_v3 = vadd.f32 %v570_v1, %v2626_v56  ;;  %2021 = vmatprep.subr.bf16.mxu0 %v2199_v6 }
 0x126   : > { %862 = vmatmul.mubr.f32.gmra.mrb[46].mxu1 %v629_v58  ;;  %v631_v15 = vmax.f32 %v473_v59, 0.0 }
 0x127   : > { %v632_v9 = vmax.f32 %v475_v2, 0.0  ;;  %v478_v11 = vpop.f32.mrb[18].mxu0  ;;  %v574_v12 = vpop.f32.mrb[18].mxu1 }
 0x128   : > { %v479_v17 = vadd.f32 %v478_v11, %v2622_v55  ;;  %v480_v18 = vpop.f32.mrb[19].mxu0  ;;  %v2770_v19 = vadd.f32 %v574_v12, %v2622_v55  ;;  %v576_v20 = vpop.f32.mrb[19].mxu1  ;;  %2023 = vmatpush1.bf16.msra.mxu0 %v2022_v4 }
 0x129   : > { %v481_v21 = vadd.f32 %v480_v18, %v2626_v56  ;;  %867 = vmatprep.mubr.f32.mxu1 %v632_v9  ;;  %v2774_v22 = vadd.f32 %v576_v20, %v2626_v56  ;;  %2024 = vmatprep.subr.bf16.mxu0 %v2199_v6 }
 0x12a   : > { %868 = vmatmul.mubr.f32.gmra.mrb[48].mxu1 %v631_v15  ;;  %v633_v33 = vmax.f32 %v479_v17, 0.0 }
 0x12b   : > { %v634_v28 = vmax.f32 %v481_v21, 0.0  ;;  %v484_v31 = vpop.f32.mrb[20].mxu0  ;;  %v580_v32 = vpop.f32.mrb[20].mxu1 }
 0x12c   : > { %v485_v34 = vadd.f32 %v484_v31, %v2622_v55  ;;  %v486_v35 = vpop.f32.mrb[21].mxu0  ;;  %v2785_v36 = vadd.f32 %v580_v32, %v2622_v55  ;;  %v582_v37 = vpop.f32.mrb[21].mxu1  ;;  %v1103_v31 = vld [vmem:[%s3576_s5 + $0xd8] sm:$0xff]  ;;  %2026 = vmatpush1.bf16.msra.mxu0 %v2025_v27 }
 0x12d   : > { %v487_v38 = vadd.f32 %v486_v35, %v2626_v56  ;;  %873 = vmatprep.mubr.f32.mxu1 %v634_v28  ;;  %v2789_v40 = vadd.f32 %v582_v37, %v2626_v56  ;;  %v1102_v28 = vld [vmem:[%s3576_s5 + $0xd0] sm:$0xff]  ;;  %2027 = vmatprep.subr.bf16.mxu0 %v2199_v6 }
 0x12e   : > { %874 = vmatmul.mubr.f32.gmra.mrb[50].mxu1 %v633_v33  ;;  %v635_v49 = vmax.f32 %v485_v34, 0.0 }
 0x12f   : > { %v636_v47 = vmax.f32 %v487_v38, 0.0  ;;  %v490_v48 = vpop.f32.mrb[22].mxu0  ;;  %v586_v7 = vpop.f32.mrb[22].mxu1 }
 0x130   : > { %v491_v53 = vadd.f32 %v490_v48, %v2622_v55  ;;  %v492_v58 = vpop.f32.mrb[23].mxu0  ;;  %v2800_v59 = vadd.f32 %v586_v7, %v2622_v55  ;;  %v588_v63 = vpop.f32.mrb[23].mxu1  ;;  %v2028_v48 = vpack.c.bf16 %v1103_v31, %v1102_v28  ;;  %v1104_v7 = vld [vmem:[%s3576_s5 + $0xe0] sm:$0xff] }
 0x131   : > { %v493_v1 = vadd.f32 %v492_v58, %v2626_v56  ;;  %879 = vmatprep.mubr.f32.mxu1 %v636_v47  ;;  %v2804_v2 = vadd.f32 %v588_v63, %v2626_v56 }
 0x132   : > { %880 = vmatmul.mubr.f32.gmra.mrb[52].mxu1 %v635_v49  ;;  %v637_v15 = vmax.f32 %v491_v53, 0.0  ;;  %v1105_v49 = vld [vmem:[%s3576_s5 + $0xe8] sm:$0xff]  ;;  %2029 = vmatpush1.bf16.msra.mxu0 %v2028_v48  ;;  %v654_v48 = vmax.f32 %v2684_v42, 0.0  ;;  %v657_v42 = vmax.f32 %v2710_v10, 0.0  ;;  %v661_v10 = vmax.f32 %v2740_v41, 0.0 }
 0x133   : > { %v638_v9 = vmax.f32 %v493_v1, 0.0  ;;  %v496_v11 = vpop.f32.mrb[24].mxu0  ;;  %v592_v12 = vpop.f32.mrb[24].mxu1  ;;  %2030 = vmatprep.subr.bf16.mxu0 %v2199_v6 }
 0x134   : > { %v497_v17 = vadd.f32 %v496_v11, %v2622_v55  ;;  %v498_v18 = vpop.f32.mrb[25].mxu0  ;;  %v2815_v20 = vadd.f32 %v592_v12, %v2622_v55  ;;  %v594_v21 = vpop.f32.mrb[25].mxu1 }
 0x135   : > { %v499_v23 = vadd.f32 %v498_v18, %v2626_v56  ;;  %885 = vmatprep.mubr.f32.mxu1 %v638_v9  ;;  %v2819_v24 = vadd.f32 %v594_v21, %v2626_v56  ;;  %v523_v21 = vadd.f32 %v2632_v62, %v2626_v56 }
 0x136   : > { %886 = vmatmul.mubr.f32.gmra.mrb[54].mxu1 %v637_v15  ;;  %v639_v35 = vmax.f32 %v497_v17, 0.0  ;;  %v2031_v15 = vpack.c.bf16 %v1105_v49, %v1104_v7  ;;  %v656_v7 = vmax.f32 %v2699_v60, 0.0  ;;  %v662_v60 = vmax.f32 %v2744_v45, 0.0 }
 0x137   : > { %v640_v32 = vmax.f32 %v499_v23, 0.0  ;;  %v502_v33 = vpop.f32.mrb[26].mxu0  ;;  %v598_v34 = vpop.f32.mrb[26].mxu1  ;;  %v666_v49 = vmax.f32 %v2774_v22, 0.0  ;;  %v668_v45 = vmax.f32 %v2789_v40, 0.0  ;;  %v672_v41 = vmax.f32 %v2819_v24, 0.0 }
 0x138   : > { %v503_v37 = vadd.f32 %v502_v33, %v2622_v55  ;;  %v504_v38 = vpop.f32.mrb[27].mxu0  ;;  %v2830_v43 = vadd.f32 %v598_v34, %v2622_v55  ;;  %v600_v44 = vpop.f32.mrb[27].mxu1  ;;  %2032 = vmatpush1.bf16.msra.mxu0 %v2031_v15  ;;  %v669_v22 = vmax.f32 %v2800_v59, 0.0  ;;  %v671_v40 = vmax.f32 %v2815_v20, 0.0  ;;  %v743_v20 = vld [vmem:[%s3575_s4] sm:$0x3] }
 0x139   : > { %v505_v46 = vadd.f32 %v504_v38, %v2626_v56  ;;  %891 = vmatprep.mubr.f32.mxu1 %v640_v32  ;;  %v2834_v47 = vadd.f32 %v600_v44, %v2626_v56  ;;  %2033 = vmatprep.subr.bf16.mxu0 %v2199_v6  ;;  %v650_v44 = vmax.f32 %v2654_v16, 0.0  ;;  %v651_v6 = vmax.f32 %v2665_v26, 0.0  ;;  %v1106_v26 = vld [vmem:[%s3576_s5 + $0xf0] sm:$0xff] }
 0x13a   : > { %892 = vmatmul.mubr.f32.gmra.mrb[56].mxu1 %v639_v35  ;;  %v641_v1 = vmax.f32 %v503_v37, 0.0  ;;  %v648_v37 = vmax.f32 %v523_v21, 0.0  ;;  %v653_v16 = vmax.f32 %v2680_v39, 0.0  ;;  %v1107_v39 = vld [vmem:[%s3576_s5 + $0xf8] sm:$0xff] }
 0x13b   : > { %v642_v53 = vmax.f32 %v505_v46, 0.0  ;;  %v508_v58 = vpop.f32.mrb[28].mxu0  ;;  %v604_v63 = vpop.f32.mrb[28].mxu1  ;;  %v652_v46 = vmax.f32 %v2669_v29, 0.0  ;;  %v655_v29 = vmax.f32 %v2695_v57, 0.0  ;;  %v659_v57 = vmax.f32 %v2725_v25, 0.0 }
 0x13c   : > { %v509_v4 = vadd.f32 %v508_v58, %v2622_v55  ;;  %v510_v5 = vpop.f32.mrb[29].mxu0  ;;  %v2845_v8 = vadd.f32 %v604_v63, %v2622_v55  ;;  %v606_v9 = vpop.f32.mrb[29].mxu1  ;;  %v665_v58 = vmax.f32 %v2770_v19, 0.0  ;;  %v670_v25 = vmax.f32 %v2804_v2, 0.0 }
 0x13d   : > { %v511_v11 = vadd.f32 %v510_v5, %v2626_v56  ;;  %897 = vmatprep.mubr.f32.mxu1 %v642_v53  ;;  %v2849_v12 = vadd.f32 %v606_v9, %v2626_v56  ;;  %v663_v53 = vmax.f32 %v2755_v0, 0.0  ;;  %v674_v0 = vmax.f32 %v2834_v47, 0.0 }
 0x13e   : > { %898 = vmatmul.mubr.f32.gmra.mrb[58].mxu1 %v641_v1  ;;  %v643_v27 = vmax.f32 %v509_v4, 0.0  ;;  %v673_v2 = vmax.f32 %v2830_v43, 0.0  ;;  %v675_v24 = vmax.f32 %v2845_v8, 0.0  ;;  %v2905_v47 = vrot.slane %v743_v20, %v350_v52 }
 0x13f   : > { %v644_v17 = vmax.f32 %v511_v11, 0.0  ;;  %v514_v18 = vpop.f32.mrb[30].mxu0  ;;  %v610_v23 = vpop.f32.mrb[30].mxu1  ;;  %v676_v19 = vmax.f32 %v2849_v12, 0.0  ;;  %v2909_v43 = vrot.slane %v743_v20, %v354_v54 }
 0x140   : > { %v515_v28 = vadd.f32 %v514_v18, %v2622_v55  ;;  %v516_v31 = vpop.f32.mrb[31].mxu0  ;;  %v2856_v32 = vadd.f32 %v610_v23, %v2622_v55  ;;  %v612_v33 = vpop.f32.mrb[31].mxu1  ;;  %v647_v55 = vmax.f32 %v2630_v61, 0.0  ;;  %v658_v61 = vmax.f32 %v2714_v14, 0.0 }
 0x141   : > { %v517_v34 = vadd.f32 %v516_v31, %v2626_v56  ;;  %903 = vmatprep.mubr.f32.mxu1 %v644_v17  ;;  %v2860_v35 = vadd.f32 %v612_v33, %v2626_v56  ;;  %v649_v56 = vmax.f32 %v2650_v13, 0.0  ;;  %v660_v13 = vmax.f32 %v2729_v30, 0.0 }
 0x142   : > { %904 = vmatmul.mubr.f32.gmra.mrb[60].mxu1 %v643_v27  ;;  %v645_v38 = vmax.f32 %v515_v28, 0.0  ;;  %v2034_v14 = vpack.c.bf16 %v1107_v39, %v1106_v26  ;;  %v664_v30 = vmax.f32 %v2759_v3, 0.0  ;;  %v667_v3 = vmax.f32 %v2785_v36, 0.0 }
 0x143   : > { %v646_v62 = vmax.f32 %v517_v34, 0.0  ;;  %v678_v36 = vmax.f32 %v2860_v35, 0.0  ;;  %v677_v59 = vmax.f32 %v2856_v32, 0.0 }
 0x144   : > { %2035 = vmatpush1.bf16.msra.mxu0 %v2034_v14 }
 0x145   : > { %909 = vmatprep.mubr.f32.mxu1 %v646_v62 }
 0x146   : > { %910 = vmatmul.mubr.f32.gmra.mrb[62].mxu1 %v645_v38 }
 0x147   : > { %915 = vmatprep.mubr.f32.mxu1 %v648_v37 }
 0x14a   : > { %916 = vmatmul.mubr.f32.gmra.mrb[64].mxu1 %v647_v55 }
 0x14b   : > { %921 = vmatprep.mubr.f32.mxu1 %v650_v44 }
 0x14e   : > { %922 = vmatmul.mubr.f32.gmra.mrb[66].mxu1 %v649_v56 }
 0x14f   : > { %927 = vmatprep.mubr.f32.mxu1 %v652_v46 }
 0x152   : > { %928 = vmatmul.mubr.f32.gmra.mrb[68].mxu1 %v651_v6 }
 0x153   : > { %933 = vmatprep.mubr.f32.mxu1 %v654_v48 }
 0x156   : > { %934 = vmatmul.mubr.f32.gmra.mrb[70].mxu1 %v653_v16 }
 0x157   : > { %939 = vmatprep.mubr.f32.mxu1 %v656_v7 }
 0x15a   : > { %940 = vmatmul.mubr.f32.gmra.mrb[72].mxu1 %v655_v29 }
 0x15b   : > { %945 = vmatprep.mubr.f32.mxu1 %v658_v61 }
 0x15e   : > { %946 = vmatmul.mubr.f32.gmra.mrb[74].mxu1 %v657_v42 }
 0x15f   : > { %951 = vmatprep.mubr.f32.mxu1 %v660_v13 }
 0x162   : > { %952 = vmatmul.mubr.f32.gmra.mrb[76].mxu1 %v659_v57 }
 0x163   : > { %957 = vmatprep.mubr.f32.mxu1 %v662_v60 }
 0x166   : > { %958 = vmatmul.mubr.f32.gmra.mrb[78].mxu1 %v661_v10 }
 0x167   : > { %963 = vmatprep.mubr.f32.mxu1 %v664_v30 }
 0x16a   : > { %964 = vmatmul.mubr.f32.gmra.mrb[80].mxu1 %v663_v53 }
 0x16b   : > { %969 = vmatprep.mubr.f32.mxu1 %v666_v49 }
 0x16e   : > { %970 = vmatmul.mubr.f32.gmra.mrb[82].mxu1 %v665_v58 }
 0x16f   : > { %975 = vmatprep.mubr.f32.mxu1 %v668_v45 }
 0x172   : > { %976 = vmatmul.mubr.f32.gmra.mrb[84].mxu1 %v667_v3 }
 0x173   : > { %981 = vmatprep.mubr.f32.mxu1 %v670_v25 }
 0x176   : > { %982 = vmatmul.mubr.f32.gmra.mrb[86].mxu1 %v669_v22 }
 0x177   : > { %987 = vmatprep.mubr.f32.mxu1 %v672_v41 }
 0x17a   : > { %988 = vmatmul.mubr.f32.gmra.mrb[88].mxu1 %v671_v40 }
 0x17b   : > { %993 = vmatprep.mubr.f32.mxu1 %v674_v0 }
 0x17e   : > { %994 = vmatmul.mubr.f32.gmra.mrb[90].mxu1 %v673_v2 }
 0x17f   : > { %999 = vmatprep.mubr.f32.mxu1 %v676_v19 }
 0x182   : > { %1000 = vmatmul.mubr.f32.gmra.mrb[92].mxu1 %v675_v24 }
 0x183   : > { %1005 = vmatprep.mubr.f32.mxu1 %v678_v36 }
 0x186   : > { %1006 = vmatmul.mubr.f32.gmra.mrb[94].mxu1 %v677_v59 }
 0x1dd   : > { %v821_v63 = vpop.f32.mrb[32].mxu1 }
 0x1de   : > { %v822_v1 = vadd.f32 %v821_v63, %v2905_v47  ;;  %v823_v4 = vpop.f32.mrb[33].mxu1 }
 0x1df   : > { %v824_v5 = vadd.f32 %v823_v4, %v2909_v43 }
 0x1e0   : > { %v1012_v11 = vmax.f32 %v822_v1, 0.0 }
 0x1e1   : > { %v1013_v8 = vmax.f32 %v824_v5, 0.0  ;;  %v827_v9 = vpop.f32.mrb[34].mxu1 }
 0x1e2   : > { %v828_v12 = vadd.f32 %v827_v9, %v2905_v47  ;;  %v829_v15 = vpop.f32.mrb[35].mxu1 }
 0x1e3   : > { %v830_v17 = vadd.f32 %v829_v15, %v2909_v43  ;;  %1179 = vmatprep.mubr.f32.mxu0 %v1013_v8 }
 0x1e4   : > { %1180 = vmatmul.mubr.f32.vlgmr.msra.gmra.mrb[32].mxu0 %v1012_v11  ;;  %v1014_v54 = vmax.f32 %v828_v12, 0.0 }
 0x1e5   : > { %v1015_v52 = vmax.f32 %v830_v17, 0.0  ;;  %v833_v51 = vpop.f32.mrb[36].mxu1 }
 0x1e6   : > { %v834_v18 = vadd.f32 %v833_v51, %v2905_v47  ;;  %v835_v21 = vpop.f32.mrb[37].mxu1 }
 0x1e7   : > { %v836_v23 = vadd.f32 %v835_v21, %v2909_v43  ;;  %1184 = vmatprep.mubr.f32.mxu0 %v1015_v52 }
 0x1e8   : > { %1185 = vmatmul.mubr.f32.gmra.mrb[34].mxu0 %v1014_v54  ;;  %v1016_v31 = vmax.f32 %v834_v18, 0.0 }
 0x1e9   : > { %v1017_v27 = vmax.f32 %v836_v23, 0.0  ;;  %v839_v28 = vpop.f32.mrb[38].mxu1 }
 0x1ea   : > { %v840_v32 = vadd.f32 %v839_v28, %v2905_v47  ;;  %v841_v33 = vpop.f32.mrb[39].mxu1 }
 0x1eb   : > { %v842_v34 = vadd.f32 %v841_v33, %v2909_v43  ;;  %1189 = vmatprep.mubr.f32.mxu0 %v1017_v27 }
 0x1ec   : > { %1190 = vmatmul.mubr.f32.gmra.mrb[36].mxu0 %v1016_v31  ;;  %v1018_v37 = vmax.f32 %v840_v32, 0.0 }
 0x1ed   : > { %v1019_v35 = vmax.f32 %v842_v34, 0.0  ;;  %v845_v62 = vpop.f32.mrb[40].mxu1 }
 0x1ee   : > { %v846_v38 = vadd.f32 %v845_v62, %v2905_v47  ;;  %v847_v44 = vpop.f32.mrb[41].mxu1 }
 0x1ef   : > { %v848_v55 = vadd.f32 %v847_v44, %v2909_v43  ;;  %1194 = vmatprep.mubr.f32.mxu0 %v1019_v35 }
 0x1f0   : > { %1195 = vmatmul.mubr.f32.gmra.mrb[38].mxu0 %v1018_v37  ;;  %v1020_v48 = vmax.f32 %v846_v38, 0.0 }
 0x1f1   : > { %v1021_v46 = vmax.f32 %v848_v55, 0.0  ;;  %v851_v56 = vpop.f32.mrb[42].mxu1 }
 0x1f2   : > { %v852_v6 = vadd.f32 %v851_v56, %v2905_v47  ;;  %v853_v7 = vpop.f32.mrb[43].mxu1 }
 0x1f3   : > { %v854_v16 = vadd.f32 %v853_v7, %v2909_v43  ;;  %1199 = vmatprep.mubr.f32.mxu0 %v1021_v46 }
 0x1f4   : > { %1200 = vmatmul.mubr.f32.gmra.mrb[40].mxu0 %v1020_v48  ;;  %v1022_v13 = vmax.f32 %v852_v6, 0.0 }
 0x1f5   : > { %v1023_v61 = vmax.f32 %v854_v16, 0.0  ;;  %v857_v29 = vpop.f32.mrb[44].mxu1 }
 0x1f6   : > { %v858_v42 = vadd.f32 %v857_v29, %v2905_v47  ;;  %v859_v26 = vpop.f32.mrb[45].mxu1 }
 0x1f7   : > { %v860_v39 = vadd.f32 %v859_v26, %v2909_v43  ;;  %1204 = vmatprep.mubr.f32.mxu0 %v1023_v61 }
 0x1f8   : > { %1205 = vmatmul.mubr.f32.gmra.mrb[42].mxu0 %v1022_v13  ;;  %v1024_v57 = vmax.f32 %v858_v42, 0.0 }
 0x1f9   : > { %v1025_v60 = vmax.f32 %v860_v39, 0.0  ;;  %v863_v14 = vpop.f32.mrb[46].mxu1 }
 0x1fa   : > { %v864_v30 = vadd.f32 %v863_v14, %v2905_v47  ;;  %v865_v10 = vpop.f32.mrb[47].mxu1 }
 0x1fb   : > { %v866_v49 = vadd.f32 %v865_v10, %v2909_v43  ;;  %1209 = vmatprep.mubr.f32.mxu0 %v1025_v60 }
 0x1fc   : > { %1210 = vmatmul.mubr.f32.gmra.mrb[44].mxu0 %v1024_v57  ;;  %v1026_v58 = vmax.f32 %v864_v30, 0.0 }
 0x1fd   : > { %v1027_v53 = vmax.f32 %v866_v49, 0.0  ;;  %v869_v45 = vpop.f32.mrb[48].mxu1 }
 0x1fe   : > { %v870_v25 = vadd.f32 %v869_v45, %v2905_v47  ;;  %v871_v3 = vpop.f32.mrb[49].mxu1 }
 0x1ff   : > { %v872_v41 = vadd.f32 %v871_v3, %v2909_v43  ;;  %1214 = vmatprep.mubr.f32.mxu0 %v1027_v53 }
 0x200   : > { %1215 = vmatmul.mubr.f32.gmra.mrb[46].mxu0 %v1026_v58  ;;  %v1028_v40 = vmax.f32 %v870_v25, 0.0 }
 0x201   : > { %v1029_v22 = vmax.f32 %v872_v41, 0.0  ;;  %v875_v0 = vpop.f32.mrb[50].mxu1 }
 0x202   : > { %v876_v19 = vadd.f32 %v875_v0, %v2905_v47  ;;  %v877_v2 = vpop.f32.mrb[51].mxu1 }
 0x203   : > { %v878_v36 = vadd.f32 %v877_v2, %v2909_v43  ;;  %1219 = vmatprep.mubr.f32.mxu0 %v1029_v22 }
 0x204   : > { %1220 = vmatmul.mubr.f32.gmra.mrb[48].mxu0 %v1028_v40  ;;  %v1030_v20 = vmax.f32 %v876_v19, 0.0 }
 0x205   : > { %v1031_v24 = vmax.f32 %v878_v36, 0.0  ;;  %v881_v59 = vpop.f32.mrb[52].mxu1 }
 0x206   : > { %v882_v63 = vadd.f32 %v881_v59, %v2905_v47  ;;  %v883_v1 = vpop.f32.mrb[53].mxu1 }
 0x207   : > { %v884_v4 = vadd.f32 %v883_v1, %v2909_v43  ;;  %1224 = vmatprep.mubr.f32.mxu0 %v1031_v24 }
 0x208   : > { %1225 = vmatmul.mubr.f32.gmra.mrb[50].mxu0 %v1030_v20  ;;  %v1032_v9 = vmax.f32 %v882_v63, 0.0 }
 0x209   : > { %v1033_v5 = vmax.f32 %v884_v4, 0.0  ;;  %v887_v8 = vpop.f32.mrb[54].mxu1 }
 0x20a   : > { %v888_v11 = vadd.f32 %v887_v8, %v2905_v47  ;;  %v889_v12 = vpop.f32.mrb[55].mxu1 }
 0x20b   : > { %v890_v15 = vadd.f32 %v889_v12, %v2909_v43  ;;  %1229 = vmatprep.mubr.f32.mxu0 %v1033_v5 }
 0x20c   : > { %1230 = vmatmul.mubr.f32.gmra.mrb[52].mxu0 %v1032_v9  ;;  %v1034_v51 = vmax.f32 %v888_v11, 0.0 }
 0x20d   : > { %v1035_v17 = vmax.f32 %v890_v15, 0.0  ;;  %v893_v52 = vpop.f32.mrb[56].mxu1 }
 0x20e   : > { %v894_v54 = vadd.f32 %v893_v52, %v2905_v47  ;;  %v895_v18 = vpop.f32.mrb[57].mxu1 }
 0x20f   : > { %v896_v21 = vadd.f32 %v895_v18, %v2909_v43  ;;  %1234 = vmatprep.mubr.f32.mxu0 %v1035_v17 }
 0x210   : > { %1235 = vmatmul.mubr.f32.gmra.mrb[54].mxu0 %v1034_v51  ;;  %v1036_v28 = vmax.f32 %v894_v54, 0.0 }
 0x211   : > { %v1037_v23 = vmax.f32 %v896_v21, 0.0  ;;  %v899_v27 = vpop.f32.mrb[58].mxu1 }
 0x212   : > { %v900_v31 = vadd.f32 %v899_v27, %v2905_v47  ;;  %v901_v32 = vpop.f32.mrb[59].mxu1 }
 0x213   : > { %v902_v33 = vadd.f32 %v901_v32, %v2909_v43  ;;  %1239 = vmatprep.mubr.f32.mxu0 %v1037_v23 }
 0x214   : > { %1240 = vmatmul.mubr.f32.gmra.mrb[56].mxu0 %v1036_v28  ;;  %v1038_v62 = vmax.f32 %v900_v31, 0.0 }
 0x215   : > { %v1039_v34 = vmax.f32 %v902_v33, 0.0  ;;  %v905_v35 = vpop.f32.mrb[60].mxu1 }
 0x216   : > { %v906_v37 = vadd.f32 %v905_v35, %v2905_v47  ;;  %v907_v38 = vpop.f32.mrb[61].mxu1 }
 0x217   : > { %v908_v44 = vadd.f32 %v907_v38, %v2909_v43  ;;  %1244 = vmatprep.mubr.f32.mxu0 %v1039_v34 }
 0x218   : > { %1245 = vmatmul.mubr.f32.gmra.mrb[58].mxu0 %v1038_v62  ;;  %v1040_v56 = vmax.f32 %v906_v37, 0.0 }
 0x219   : > { %v1041_v55 = vmax.f32 %v908_v44, 0.0  ;;  %v911_v46 = vpop.f32.mrb[62].mxu1 }
 0x21a   : > { %v912_v48 = vadd.f32 %v911_v46, %v2905_v47  ;;  %v913_v6 = vpop.f32.mrb[63].mxu1 }
 0x21b   : > { %v914_v7 = vadd.f32 %v913_v6, %v2909_v43  ;;  %1249 = vmatprep.mubr.f32.mxu0 %v1041_v55 }
 0x21c   : > { %1250 = vmatmul.mubr.f32.gmra.mrb[60].mxu0 %v1040_v56  ;;  %v1042_v29 = vmax.f32 %v912_v48, 0.0 }
 0x21d   : > { %v1043_v16 = vmax.f32 %v914_v7, 0.0  ;;  %v917_v61 = vpop.f32.mrb[64].mxu1 }
 0x21e   : > { %v918_v13 = vadd.f32 %v917_v61, %v2905_v47  ;;  %v919_v42 = vpop.f32.mrb[65].mxu1 }
 0x21f   : > { %v920_v26 = vadd.f32 %v919_v42, %v2909_v43  ;;  %1254 = vmatprep.mubr.f32.mxu0 %v1043_v16 }
 0x220   : > { %1255 = vmatmul.mubr.f32.gmra.mrb[62].mxu0 %v1042_v29  ;;  %v1044_v14 = vmax.f32 %v918_v13, 0.0 }
 0x221   : > { %v1045_v39 = vmax.f32 %v920_v26, 0.0  ;;  %v923_v60 = vpop.f32.mrb[66].mxu1 }
 0x222   : > { %v924_v57 = vadd.f32 %v923_v60, %v2905_v47  ;;  %v925_v30 = vpop.f32.mrb[67].mxu1 }
 0x223   : > { %v926_v10 = vadd.f32 %v925_v30, %v2909_v43  ;;  %1259 = vmatprep.mubr.f32.mxu0 %v1045_v39 }
 0x224   : > { %1260 = vmatmul.mubr.f32.gmra.mrb[64].mxu0 %v1044_v14  ;;  %v1046_v45 = vmax.f32 %v924_v57, 0.0 }
 0x225   : > { %v1047_v49 = vmax.f32 %v926_v10, 0.0  ;;  %v929_v53 = vpop.f32.mrb[68].mxu1 }
 0x226   : > { %v930_v58 = vadd.f32 %v929_v53, %v2905_v47  ;;  %v931_v25 = vpop.f32.mrb[69].mxu1 }
 0x227   : > { %v932_v3 = vadd.f32 %v931_v25, %v2909_v43  ;;  %1264 = vmatprep.mubr.f32.mxu0 %v1047_v49 }
 0x228   : > { %1265 = vmatmul.mubr.f32.gmra.mrb[66].mxu0 %v1046_v45  ;;  %v1048_v0 = vmax.f32 %v930_v58, 0.0 }
 0x229   : > { %v1049_v41 = vmax.f32 %v932_v3, 0.0  ;;  %v935_v22 = vpop.f32.mrb[70].mxu1 }
 0x22a   : > { %v936_v40 = vadd.f32 %v935_v22, %v2905_v47  ;;  %v937_v19 = vpop.f32.mrb[71].mxu1 }
 0x22b   : > { %v938_v2 = vadd.f32 %v937_v19, %v2909_v43  ;;  %1269 = vmatprep.mubr.f32.mxu0 %v1049_v41 }
 0x22c   : > { %1270 = vmatmul.mubr.f32.gmra.mrb[68].mxu0 %v1048_v0  ;;  %v1050_v59 = vmax.f32 %v936_v40, 0.0 }
 0x22d   : > { %v1051_v36 = vmax.f32 %v938_v2, 0.0  ;;  %v941_v24 = vpop.f32.mrb[72].mxu1 }
 0x22e   : > { %v942_v20 = vadd.f32 %v941_v24, %v2905_v47  ;;  %v943_v63 = vpop.f32.mrb[73].mxu1 }
 0x22f   : > { %v944_v1 = vadd.f32 %v943_v63, %v2909_v43  ;;  %1274 = vmatprep.mubr.f32.mxu0 %v1051_v36 }
 0x230   : > { %1275 = vmatmul.mubr.f32.gmra.mrb[70].mxu0 %v1050_v59  ;;  %v1052_v8 = vmax.f32 %v942_v20, 0.0 }
 0x231   : > { %v1053_v4 = vmax.f32 %v944_v1, 0.0  ;;  %v947_v5 = vpop.f32.mrb[74].mxu1 }
 0x232   : > { %v948_v9 = vadd.f32 %v947_v5, %v2905_v47  ;;  %v949_v11 = vpop.f32.mrb[75].mxu1 }
 0x233   : > { %v950_v12 = vadd.f32 %v949_v11, %v2909_v43  ;;  %1279 = vmatprep.mubr.f32.mxu0 %v1053_v4 }
 0x234   : > { %1280 = vmatmul.mubr.f32.gmra.mrb[72].mxu0 %v1052_v8  ;;  %v1054_v52 = vmax.f32 %v948_v9, 0.0 }
 0x235   : > { %v1055_v15 = vmax.f32 %v950_v12, 0.0  ;;  %v953_v17 = vpop.f32.mrb[76].mxu1 }
 0x236   : > { %v954_v51 = vadd.f32 %v953_v17, %v2905_v47  ;;  %v955_v54 = vpop.f32.mrb[77].mxu1  ;;  %v2976_v17 = vand.u32 127, %v348_v50 }
 0x237   : > { %v956_v18 = vadd.f32 %v955_v54, %v2909_v43  ;;  %1284 = vmatprep.mubr.f32.mxu0 %v1055_v15 }
 0x238   : > { %1285 = vmatmul.mubr.f32.gmra.mrb[74].mxu0 %v1054_v52  ;;  %v1056_v27 = vmax.f32 %v954_v51, 0.0  ;;  %v2981_v52 = vld [vmem:[%s3577_s6] ss:$0 sm:$0xff]  ;;  %vm1342_vm0 = vcmp.lt.s32.totalorder %v2976_v17, 32  ;;  %vm1759_vm1 = vcmp.eq.s32.totalorder %v2976_v17, 32 }
 0x239   : > { %v1057_v21 = vmax.f32 %v956_v18, 0.0  ;;  %v959_v23 = vpop.f32.mrb[78].mxu1 }
 0x23a   : > { %v960_v28 = vadd.f32 %v959_v23, %v2905_v47  ;;  %v961_v31 = vpop.f32.mrb[79].mxu1 }
 0x23b   : > { %v962_v32 = vadd.f32 %v961_v31, %v2909_v43  ;;  %1289 = vmatprep.mubr.f32.mxu0 %v1057_v21 }
 0x23c   : > { %1290 = vmatmul.mubr.f32.gmra.mrb[76].mxu0 %v1056_v27  ;;  %v1058_v35 = vmax.f32 %v960_v28, 0.0 }
 0x23d   : > { %v1059_v33 = vmax.f32 %v962_v32, 0.0  ;;  %v965_v34 = vpop.f32.mrb[80].mxu1 }
 0x23e   : > { %v966_v62 = vadd.f32 %v965_v34, %v2905_v47  ;;  %v967_v37 = vpop.f32.mrb[81].mxu1 }
 0x23f   : > { %v968_v38 = vadd.f32 %v967_v37, %v2909_v43  ;;  %1294 = vmatprep.mubr.f32.mxu0 %v1059_v33 }
 0x240   : > { %1295 = vmatmul.mubr.f32.gmra.mrb[78].mxu0 %v1058_v35  ;;  %v1060_v46 = vmax.f32 %v966_v62, 0.0 }
 0x241   : > { %v1061_v44 = vmax.f32 %v968_v38, 0.0  ;;  %v971_v55 = vpop.f32.mrb[82].mxu1 }
 0x242   : > { %v972_v56 = vadd.f32 %v971_v55, %v2905_v47  ;;  %v973_v48 = vpop.f32.mrb[83].mxu1 }
 0x243   : > { %v974_v6 = vadd.f32 %v973_v48, %v2909_v43  ;;  %1299 = vmatprep.mubr.f32.mxu0 %v1061_v44 }
 0x244   : > { %1300 = vmatmul.mubr.f32.gmra.mrb[80].mxu0 %v1060_v46  ;;  %v1062_v61 = vmax.f32 %v972_v56, 0.0 }
 0x245   : > { %v1063_v7 = vmax.f32 %v974_v6, 0.0  ;;  %v977_v16 = vpop.f32.mrb[84].mxu1 }
 0x246   : > { %v978_v29 = vadd.f32 %v977_v16, %v2905_v47  ;;  %v979_v13 = vpop.f32.mrb[85].mxu1 }
 0x247   : > { %v980_v42 = vadd.f32 %v979_v13, %v2909_v43  ;;  %1304 = vmatprep.mubr.f32.mxu0 %v1063_v7 }
 0x248   : > { %1305 = vmatmul.mubr.f32.gmra.mrb[82].mxu0 %v1062_v61  ;;  %v1064_v60 = vmax.f32 %v978_v29, 0.0 }
 0x249   : > { %v1065_v26 = vmax.f32 %v980_v42, 0.0  ;;  %v983_v39 = vpop.f32.mrb[86].mxu1 }
 0x24a   : > { %v984_v14 = vadd.f32 %v983_v39, %v2905_v47  ;;  %v985_v57 = vpop.f32.mrb[87].mxu1 }
 0x24b   : > { %v986_v30 = vadd.f32 %v985_v57, %v2909_v43  ;;  %1309 = vmatprep.mubr.f32.mxu0 %v1065_v26 }
 0x24c   : > { %1310 = vmatmul.mubr.f32.gmra.mrb[84].mxu0 %v1064_v60  ;;  %v1066_v53 = vmax.f32 %v984_v14, 0.0 }
 0x24d   : > { %v1067_v10 = vmax.f32 %v986_v30, 0.0  ;;  %v989_v49 = vpop.f32.mrb[88].mxu1 }
 0x24e   : > { %v990_v45 = vadd.f32 %v989_v49, %v2905_v47  ;;  %v991_v58 = vpop.f32.mrb[89].mxu1 }
 0x24f   : > { %v992_v25 = vadd.f32 %v991_v58, %v2909_v43  ;;  %1314 = vmatprep.mubr.f32.mxu0 %v1067_v10 }
 0x250   : > { %1315 = vmatmul.mubr.f32.gmra.mrb[86].mxu0 %v1066_v53  ;;  %v1068_v22 = vmax.f32 %v990_v45, 0.0 }
 0x251   : > { %v1069_v3 = vmax.f32 %v992_v25, 0.0  ;;  %v995_v41 = vpop.f32.mrb[90].mxu1 }
 0x252   : > { %v996_v0 = vadd.f32 %v995_v41, %v2905_v47  ;;  %v997_v40 = vpop.f32.mrb[91].mxu1 }
 0x253   : > { %v998_v19 = vadd.f32 %v997_v40, %v2909_v43  ;;  %1319 = vmatprep.mubr.f32.mxu0 %v1069_v3 }
 0x254   : > { %1320 = vmatmul.mubr.f32.gmra.mrb[88].mxu0 %v1068_v22  ;;  %v1070_v24 = vmax.f32 %v996_v0, 0.0 }
 0x255   : > { %v1071_v2 = vmax.f32 %v998_v19, 0.0  ;;  %v1001_v36 = vpop.f32.mrb[92].mxu1 }
 0x256   : > { %v1002_v59 = vadd.f32 %v1001_v36, %v2905_v47  ;;  %v1003_v20 = vpop.f32.mrb[93].mxu1 }
 0x257   : > { %v1004_v63 = vadd.f32 %v1003_v20, %v2909_v43  ;;  %1324 = vmatprep.mubr.f32.mxu0 %v1071_v2 }
 0x258   : > { %1325 = vmatmul.mubr.f32.gmra.mrb[90].mxu0 %v1070_v24  ;;  %v1072_v5 = vmax.f32 %v1002_v59, 0.0 }
 0x259   : > { %v1073_v1 = vmax.f32 %v1004_v63, 0.0  ;;  %v1007_v4 = vpop.f32.mrb[94].mxu1 }
 0x25a   : > { %v1008_v8 = vadd.f32 %v1007_v4, %v2905_v47  ;;  %v1009_v9 = vpop.f32.mrb[95].mxu1 }
 0x25b   : > { %v1010_v11 = vadd.f32 %v1009_v9, %v2909_v43  ;;  %1329 = vmatprep.mubr.f32.mxu0 %v1073_v1 }
 0x25c   : > { %1330 = vmatmul.mubr.f32.gmra.mrb[92].mxu0 %v1072_v5  ;;  %v1074_v15 = vmax.f32 %v1008_v8, 0.0 }
 0x25d   : > { %v1075_v12 = vmax.f32 %v1010_v11, 0.0 }
 0x25f   : > { %1334 = vmatprep.mubr.f32.mxu0 %v1075_v12 }
 0x260   : > { %1335 = vmatmul.mubr.f32.gmra.mrb[94].mxu0 %v1074_v15 }
 0x2b7   : > { %v1181_v51 = vpop.f32.mrb[32].mxu0 }
 0x2b8   : > { %v2985_v47 = vadd.f32 %v2981_v52, %v1181_v51  ;;  %v1183_v43 = vpop.f32.mrb[33].mxu0 }
 0x2ba   : > { %v2990_v54 = vsel %vm1342_vm0, %v2985_v47, -1e+30 }
 0x2bb   : > { %v1186_v18 = vpop.f32.mrb[34].mxu0  ;;  %1375 = vmax.xlane.f32.xlu0 %v2990_v54 }
 0x2bc   : > { %v2994_v50 = vadd.f32 %v2981_v52, %v1186_v18  ;;  %v1188_v21 = vpop.f32.mrb[35].mxu0 }
 0x2be   : > { %v2999_v23 = vsel %vm1342_vm0, %v2994_v50, -1e+30 }
 0x2bf   : > { %v1191_v27 = vpop.f32.mrb[36].mxu0  ;;  %1377 = vmax.xlane.f32.xlu0 %v2999_v23 }
 0x2c0   : > { %v3003_v28 = vadd.f32 %v2981_v52, %v1191_v27  ;;  %v1193_v31 = vpop.f32.mrb[37].mxu0 }
 0x2c2   : > { %v3008_v32 = vsel %vm1342_vm0, %v3003_v28, -1e+30 }
 0x2c3   : > { %v1196_v33 = vpop.f32.mrb[38].mxu0  ;;  %1379 = vmax.xlane.f32.xlu1 %v3008_v32 }
 0x2c4   : > { %v3012_v34 = vadd.f32 %v2981_v52, %v1196_v33  ;;  %v1198_v35 = vpop.f32.mrb[39].mxu0 }
 0x2c6   : > { %v3017_v62 = vsel %vm1342_vm0, %v3012_v34, -1e+30 }
 0x2c7   : > { %v1201_v37 = vpop.f32.mrb[40].mxu0  ;;  %1381 = vmax.xlane.f32.xlu1 %v3017_v62 }
 0x2c8   : > { %v3021_v38 = vadd.f32 %v2981_v52, %v1201_v37  ;;  %v1203_v44 = vpop.f32.mrb[41].mxu0 }
 0x2ca   : > { %v3026_v55 = vsel %vm1342_vm0, %v3021_v38, -1e+30 }
 0x2cb   : > { %v1206_v46 = vpop.f32.mrb[42].mxu0  ;;  %1383 = vmax.xlane.f32.xlu0 %v3026_v55 }
 0x2cc   : > { %v3030_v56 = vadd.f32 %v2981_v52, %v1206_v46  ;;  %v1208_v48 = vpop.f32.mrb[43].mxu0 }
 0x2ce   : > { %v3035_v6 = vsel %vm1342_vm0, %v3030_v56, -1e+30 }
 0x2cf   : > { %v1211_v7 = vpop.f32.mrb[44].mxu0  ;;  %1385 = vmax.xlane.f32.xlu1 %v3035_v6 }
 0x2d0   : > { %v3039_v16 = vadd.f32 %v2981_v52, %v1211_v7  ;;  %v1213_v61 = vpop.f32.mrb[45].mxu0 }
 0x2d2   : > { %v3044_v29 = vsel %vm1342_vm0, %v3039_v16, -1e+30 }
 0x2d3   : > { %v1216_v13 = vpop.f32.mrb[46].mxu0  ;;  %1387 = vmax.xlane.f32.xlu0 %v3044_v29 }
 0x2d4   : > { %v3048_v42 = vadd.f32 %v2981_v52, %v1216_v13  ;;  %v1218_v26 = vpop.f32.mrb[47].mxu0 }
 0x2d6   : > { %v3053_v39 = vsel %vm1342_vm0, %v3048_v42, -1e+30 }
 0x2d7   : > { %v1221_v60 = vpop.f32.mrb[48].mxu0  ;;  %1389 = vmax.xlane.f32.xlu1 %v3053_v39 }
 0x2d8   : > { %v3057_v14 = vadd.f32 %v2981_v52, %v1221_v60  ;;  %v1223_v57 = vpop.f32.mrb[49].mxu0 }
 0x2da   : > { %v3062_v30 = vsel %vm1342_vm0, %v3057_v14, -1e+30 }
 0x2db   : > { %v1226_v10 = vpop.f32.mrb[50].mxu0  ;;  %1391 = vmax.xlane.f32.xlu0 %v3062_v30 }
 0x2dc   : > { %v3066_v49 = vadd.f32 %v2981_v52, %v1226_v10  ;;  %v1228_v53 = vpop.f32.mrb[51].mxu0 }
 0x2de   : > { %v3071_v45 = vsel %vm1342_vm0, %v3066_v49, -1e+30 }
 0x2df   : > { %v1231_v58 = vpop.f32.mrb[52].mxu0  ;;  %1393 = vmax.xlane.f32.xlu1 %v3071_v45 }
 0x2e0   : > { %v3075_v25 = vadd.f32 %v2981_v52, %v1231_v58  ;;  %v1233_v3 = vpop.f32.mrb[53].mxu0 }
 0x2e2   : > { %v3080_v41 = vsel %vm1342_vm0, %v3075_v25, -1e+30 }
 0x2e3   : > { %v1236_v22 = vpop.f32.mrb[54].mxu0  ;;  %1395 = vmax.xlane.f32.xlu0 %v3080_v41 }
 0x2e4   : > { %v3084_v0 = vadd.f32 %v2981_v52, %v1236_v22  ;;  %v1238_v40 = vpop.f32.mrb[55].mxu0 }
 0x2e6   : > { %v3089_v19 = vsel %vm1342_vm0, %v3084_v0, -1e+30 }
 0x2e7   : > { %v1241_v2 = vpop.f32.mrb[56].mxu0  ;;  %1397 = vmax.xlane.f32.xlu1 %v3089_v19 }
 0x2e8   : > { %v3093_v36 = vadd.f32 %v2981_v52, %v1241_v2  ;;  %v1243_v24 = vpop.f32.mrb[57].mxu0 }
 0x2ea   : > { %v3098_v59 = vsel %vm1342_vm0, %v3093_v36, -1e+30 }
 0x2eb   : > { %v1246_v20 = vpop.f32.mrb[58].mxu0  ;;  %1399 = vmax.xlane.f32.xlu0 %v3098_v59 }
 0x2ec   : > { %v3102_v63 = vadd.f32 %v2981_v52, %v1246_v20  ;;  %v1248_v1 = vpop.f32.mrb[59].mxu0 }
 0x2ee   : > { %v3107_v4 = vsel %vm1342_vm0, %v3102_v63, -1e+30 }
 0x2ef   : > { %v1251_v5 = vpop.f32.mrb[60].mxu0  ;;  %1401 = vmax.xlane.f32.xlu1 %v3107_v4 }
 0x2f0   : > { %v3111_v8 = vadd.f32 %v2981_v52, %v1251_v5  ;;  %v1253_v9 = vpop.f32.mrb[61].mxu0 }
 0x2f2   : > { %v3116_v11 = vsel %vm1342_vm0, %v3111_v8, -1e+30 }
 0x2f3   : > { %v1256_v12 = vpop.f32.mrb[62].mxu0  ;;  %1403 = vmax.xlane.f32.xlu0 %v3116_v11 }
 0x2f4   : > { %v3120_v15 = vadd.f32 %v2981_v52, %v1256_v12  ;;  %v1258_v51 = vpop.f32.mrb[63].mxu0 }
 0x2f6   : > { %v3125_v43 = vsel %vm1342_vm0, %v3120_v15, -1e+30 }
 0x2f7   : > { %v1261_v18 = vpop.f32.mrb[64].mxu0  ;;  %1405 = vmax.xlane.f32.xlu1 %v3125_v43 }
 0x2f8   : > { %v3129_v21 = vadd.f32 %v2981_v52, %v1261_v18  ;;  %v1263_v27 = vpop.f32.mrb[65].mxu0 }
 0x2fa   : > { %v3134_v31 = vsel %vm1342_vm0, %v3129_v21, -1e+30 }
 0x2fb   : > { %v1266_v33 = vpop.f32.mrb[66].mxu0  ;;  %1407 = vmax.xlane.f32.xlu0 %v3134_v31 }
 0x2fc   : > { %v3138_v35 = vadd.f32 %v2981_v52, %v1266_v33  ;;  %v1268_v37 = vpop.f32.mrb[67].mxu0 }
 0x2fe   : > { %v3143_v44 = vsel %vm1342_vm0, %v3138_v35, -1e+30 }
 0x2ff   : > { %v1271_v46 = vpop.f32.mrb[68].mxu0  ;;  %1409 = vmax.xlane.f32.xlu1 %v3143_v44 }
 0x300   : > { %v3147_v48 = vadd.f32 %v2981_v52, %v1271_v46  ;;  %v1273_v7 = vpop.f32.mrb[69].mxu0 }
 0x302   : > { %3597 = vst [vmem:[#allocation2_spill] sm:$0xff] %v3147_v48  ;;  %v3152_v61 = vsel %vm1342_vm0, %v3147_v48, -1e+30 }
 0x303   : > { %v1276_v13 = vpop.f32.mrb[70].mxu0  ;;  %1411 = vmax.xlane.f32.xlu0 %v3152_v61 }
 0x304   : > { %v3156_v26 = vadd.f32 %v2981_v52, %v1276_v13  ;;  %v1278_v60 = vpop.f32.mrb[71].mxu0 }
 0x306   : > { %3598 = vst [vmem:[#allocation3_spill] sm:$0xff] %v3156_v26  ;;  %v3161_v57 = vsel %vm1342_vm0, %v3156_v26, -1e+30 }
 0x307   : > { %v1281_v10 = vpop.f32.mrb[72].mxu0  ;;  %1413 = vmax.xlane.f32.xlu1 %v3161_v57 }
 0x308   : > { %v3165_v53 = vadd.f32 %v2981_v52, %v1281_v10  ;;  %v1283_v58 = vpop.f32.mrb[73].mxu0 }
 0x30a   : > { %3599 = vst [vmem:[#allocation4_spill] sm:$0xff] %v3165_v53  ;;  %v3170_v3 = vsel %vm1342_vm0, %v3165_v53, -1e+30 }
 0x30b   : > { %v1286_v22 = vpop.f32.mrb[74].mxu0  ;;  %1415 = vmax.xlane.f32.xlu0 %v3170_v3 }
 0x30c   : > { %v3174_v40 = vadd.f32 %v2981_v52, %v1286_v22  ;;  %v1288_v2 = vpop.f32.mrb[75].mxu0 }
 0x30e   : > { %3600 = vst [vmem:[#allocation5_spill] sm:$0xff] %v3174_v40  ;;  %v3179_v24 = vsel %vm1342_vm0, %v3174_v40, -1e+30 }
 0x30f   : > { %v1291_v20 = vpop.f32.mrb[76].mxu0  ;;  %1417 = vmax.xlane.f32.xlu1 %v3179_v24 }
 0x310   : > { %v3183_v1 = vadd.f32 %v2981_v52, %v1291_v20  ;;  %v1293_v5 = vpop.f32.mrb[77].mxu0 }
 0x312   : > { %3601 = vst [vmem:[#allocation6_spill] sm:$0xff] %v3183_v1  ;;  %v3188_v9 = vsel %vm1342_vm0, %v3183_v1, -1e+30 }
 0x313   : > { %v1296_v12 = vpop.f32.mrb[78].mxu0  ;;  %1419 = vmax.xlane.f32.xlu0 %v3188_v9 }
 0x314   : > { %v3192_v51 = vadd.f32 %v2981_v52, %v1296_v12  ;;  %v1298_v18 = vpop.f32.mrb[79].mxu0 }
 0x316   : > { %3602 = vst [vmem:[#allocation7_spill] sm:$0xff] %v3192_v51  ;;  %v3197_v27 = vsel %vm1342_vm0, %v3192_v51, -1e+30 }
 0x317   : > { %v1301_v33 = vpop.f32.mrb[80].mxu0  ;;  %1421 = vmax.xlane.f32.xlu1 %v3197_v27 }
 0x318   : > { %v3201_v37 = vadd.f32 %v2981_v52, %v1301_v33  ;;  %v1303_v46 = vpop.f32.mrb[81].mxu0 }
 0x31a   : > { %3603 = vst [vmem:[#allocation8_spill] sm:$0xff] %v3201_v37  ;;  %v3206_v7 = vsel %vm1342_vm0, %v3201_v37, -1e+30 }
 0x31b   : > { %v1306_v13 = vpop.f32.mrb[82].mxu0  ;;  %1423 = vmax.xlane.f32.xlu0 %v3206_v7 }
 0x31c   : > { %v3210_v60 = vadd.f32 %v2981_v52, %v1306_v13  ;;  %v1308_v10 = vpop.f32.mrb[83].mxu0 }
 0x31e   : > { %3604 = vst [vmem:[#allocation9_spill] sm:$0xff] %v3210_v60  ;;  %v3215_v58 = vsel %vm1342_vm0, %v3210_v60, -1e+30 }
 0x31f   : > { %v1311_v22 = vpop.f32.mrb[84].mxu0  ;;  %1425 = vmax.xlane.f32.xlu1 %v3215_v58 }
 0x320   : > { %v3219_v2 = vadd.f32 %v2981_v52, %v1311_v22  ;;  %v1313_v20 = vpop.f32.mrb[85].mxu0 }
 0x322   : > { %3605 = vst [vmem:[#allocation10_spill] sm:$0xff] %v3219_v2  ;;  %v3224_v5 = vsel %vm1342_vm0, %v3219_v2, -1e+30 }
 0x323   : > { %v1316_v12 = vpop.f32.mrb[86].mxu0  ;;  %1427 = vmax.xlane.f32.xlu0 %v3224_v5 }
 0x324   : > { %v3228_v18 = vadd.f32 %v2981_v52, %v1316_v12  ;;  %v1318_v33 = vpop.f32.mrb[87].mxu0 }
 0x326   : > { %3606 = vst [vmem:[#allocation11_spill] sm:$0xff] %v3228_v18  ;;  %v3233_v46 = vsel %vm1342_vm0, %v3228_v18, -1e+30 }
 0x327   : > { %v1321_v13 = vpop.f32.mrb[88].mxu0  ;;  %1429 = vmax.xlane.f32.xlu1 %v3233_v46 }
 0x328   : > { %v3237_v10 = vadd.f32 %v2981_v52, %v1321_v13  ;;  %v1323_v22 = vpop.f32.mrb[89].mxu0 }
 0x32a   : > { %3607 = vst [vmem:[#allocation12_spill] sm:$0xff] %v3237_v10  ;;  %v3242_v20 = vsel %vm1342_vm0, %v3237_v10, -1e+30 }
 0x32b   : > { %v1326_v12 = vpop.f32.mrb[90].mxu0  ;;  %1431 = vmax.xlane.f32.xlu0 %v3242_v20 }
 0x32c   : > { %v3246_v33 = vadd.f32 %v2981_v52, %v1326_v12  ;;  %v1328_v18 = vpop.f32.mrb[91].mxu0 }
 0x32e   : > { %3608 = vst [vmem:[#allocation13_spill] sm:$0xff] %v3246_v33  ;;  %v3251_v2 = vsel %vm1342_vm0, %v3246_v33, -1e+30 }
 0x32f   : > { %v1331_v13 = vpop.f32.mrb[92].mxu0  ;;  %1433 = vmax.xlane.f32.xlu1 %v3251_v2 }
 0x330   : > { %v3255_v22 = vadd.f32 %v2981_v52, %v1331_v13  ;;  %v1333_v10 = vpop.f32.mrb[93].mxu0 }
 0x332   : > { %3609 = vst [vmem:[#allocation14_spill] sm:$0xff] %v3255_v22  ;;  %v3260_v60 = vsel %vm1342_vm0, %v3255_v22, -1e+30 }
 0x333   : > { %v1336_v12 = vpop.f32.mrb[94].mxu0  ;;  %1435 = vmax.xlane.f32.xlu0 %v3260_v60 }
 0x334   : > { %v3264_v18 = vadd.f32 %v2981_v52, %v1336_v12  ;;  %v1338_v33 = vpop.f32.mrb[95].mxu0 }
 0x336   : > { %3610 = vst [vmem:[#allocation15_spill] sm:$0xff] %v3264_v18  ;;  %v3269_v37 = vsel %vm1342_vm0, %v3264_v18, -1e+30 }
 0x337   : > { %1437 = vmax.xlane.f32.xlu1 %v3269_v37 }
 0x348   : > { %v1376_v10 = vpop.xlane.xlu0 %1375 }
 0x349   : > { %v1439_v13 = vsub.f32 %v2990_v54, %v1376_v10 }
 0x34b   : > { %v1471_v51 = vmul.f32 1.442695, %v1439_v13 }
 0x34c   : > { %v1378_v22 = vpop.xlane.xlu0 %1377 }
 0x34d   : > { %2062 = vpow2.f32 %v1471_v51  ;;  %v1440_v1 = vsub.f32 %v2999_v23, %v1378_v22 }
 0x34f   : > { %v1473_v40 = vmul.f32 1.442695, %v1440_v1 }
 0x350   : > { %v1380_v53 = vpop.xlane.xlu1 %1379 }
 0x351   : > { %2064 = vpow2.f32 %v1473_v40  ;;  %v1441_v52 = vsub.f32 %v3008_v32, %v1380_v53 }
 0x353   : > { %v1475_v33 = vmul.f32 1.442695, %v1441_v52 }
 0x354   : > { %v1382_v12 = vpop.xlane.xlu1 %1381 }
 0x355   : > { %2066 = vpow2.f32 %v1475_v33  ;;  %v1442_v18 = vsub.f32 %v3017_v62, %v1382_v12 }
 0x357   : > { %v3276_v26 = vpop.eup %2062  ;;  %v1477_v48 = vmul.f32 1.442695, %v1442_v18 }
 0x358   : > { %1535 = vadd.xlane.f32.xlu0 %v3276_v26  ;;  %v1384_v54 = vpop.xlane.xlu0 %1383 }
 0x359   : > { %2068 = vpow2.f32 %v1477_v48  ;;  %v1443_v51 = vsub.f32 %v3026_v55, %v1384_v54 }
 0x35b   : > { %v3280_v23 = vpop.eup %2064  ;;  %v1479_v1 = vmul.f32 1.442695, %v1443_v51 }
 0x35c   : > { %v1386_v40 = vpop.xlane.xlu1 %1385  ;;  %1537 = vadd.xlane.f32.xlu1 %v3280_v23 }
 0x35d   : > { %2070 = vpow2.f32 %v1479_v1  ;;  %v1444_v32 = vsub.f32 %v3035_v6, %v1386_v40 }
 0x35f   : > { %v3284_v53 = vpop.eup %2066  ;;  %v1481_v62 = vmul.f32 1.442695, %v1444_v32 }
 0x360   : > { %1539 = vadd.xlane.f32.xlu0 %v3284_v53  ;;  %v1388_v22 = vpop.xlane.xlu0 %1387 }
 0x361   : > { %2072 = vpow2.f32 %v1481_v62  ;;  %v1445_v48 = vsub.f32 %v3044_v29, %v1388_v22 }
 0x363   : > { %v3288_v18 = vpop.eup %2068  ;;  %v1483_v55 = vmul.f32 1.442695, %v1445_v48 }
 0x364   : > { %v1390_v10 = vpop.xlane.xlu1 %1389  ;;  %1541 = vadd.xlane.f32.xlu1 %v3288_v18 }
 0x365   : > { %2074 = vpow2.f32 %v1483_v55  ;;  %v1446_v13 = vsub.f32 %v3053_v39, %v1390_v10 }
 0x367   : > { %v3292_v52 = vpop.eup %2070  ;;  %v1485_v6 = vmul.f32 1.442695, %v1446_v13 }
 0x368   : > { %1543 = vadd.xlane.f32.xlu0 %v3292_v52  ;;  %v1392_v33 = vpop.xlane.xlu0 %1391 }
 0x369   : > { %2076 = vpow2.f32 %v1485_v6  ;;  %v1447_v12 = vsub.f32 %v3062_v30, %v1392_v33 }
 0x36b   : > { %v3296_v54 = vpop.eup %2072  ;;  %v1487_v29 = vmul.f32 1.442695, %v1447_v12 }
 0x36c   : > { %v1394_v51 = vpop.xlane.xlu1 %1393  ;;  %1545 = vadd.xlane.f32.xlu1 %v3296_v54 }
 0x36d   : > { %2078 = vpow2.f32 %v1487_v29  ;;  %v1448_v1 = vsub.f32 %v3071_v45, %v1394_v51 }
 0x36f   : > { %v3300_v40 = vpop.eup %2074  ;;  %v1489_v39 = vmul.f32 1.442695, %v1448_v1 }
 0x370   : > { %1547 = vadd.xlane.f32.xlu0 %v3300_v40  ;;  %v1396_v32 = vpop.xlane.xlu0 %1395 }
 0x371   : > { %2080 = vpow2.f32 %v1489_v39  ;;  %v1449_v62 = vsub.f32 %v3080_v41, %v1396_v32 }
 0x373   : > { %v3304_v22 = vpop.eup %2076  ;;  %v1491_v30 = vmul.f32 1.442695, %v1449_v62 }
 0x374   : > { %v1398_v48 = vpop.xlane.xlu1 %1397  ;;  %1549 = vadd.xlane.f32.xlu1 %v3304_v22 }
 0x375   : > { %2082 = vpow2.f32 %v1491_v30  ;;  %v1450_v55 = vsub.f32 %v3089_v19, %v1398_v48 }
 0x377   : > { %v3308_v10 = vpop.eup %2078  ;;  %v1493_v45 = vmul.f32 1.442695, %v1450_v55 }
 0x378   : > { %1551 = vadd.xlane.f32.xlu0 %v3308_v10  ;;  %v1400_v13 = vpop.xlane.xlu0 %1399 }
 0x379   : > { %2084 = vpow2.f32 %v1493_v45  ;;  %v1451_v6 = vsub.f32 %v3098_v59, %v1400_v13 }
 0x37b   : > { %v3312_v33 = vpop.eup %2080  ;;  %v1495_v41 = vmul.f32 1.442695, %v1451_v6 }
 0x37c   : > { %v1402_v12 = vpop.xlane.xlu1 %1401  ;;  %1553 = vadd.xlane.f32.xlu1 %v3312_v33 }
 0x37d   : > { %2086 = vpow2.f32 %v1495_v41  ;;  %v1452_v29 = vsub.f32 %v3107_v4, %v1402_v12 }
 0x37f   : > { %v3316_v51 = vpop.eup %2082  ;;  %v1497_v19 = vmul.f32 1.442695, %v1452_v29 }
 0x380   : > { %1555 = vadd.xlane.f32.xlu0 %v3316_v51  ;;  %v1404_v1 = vpop.xlane.xlu0 %1403 }
 0x381   : > { %2088 = vpow2.f32 %v1497_v19  ;;  %v1453_v39 = vsub.f32 %v3116_v11, %v1404_v1 }
 0x383   : > { %v3320_v32 = vpop.eup %2084  ;;  %v1499_v59 = vmul.f32 1.442695, %v1453_v39 }
 0x384   : > { %v1406_v62 = vpop.xlane.xlu1 %1405  ;;  %1557 = vadd.xlane.f32.xlu1 %v3320_v32 }
 0x385   : > { %2090 = vpow2.f32 %v1499_v59  ;;  %v1454_v30 = vsub.f32 %v3125_v43, %v1406_v62 }
 0x387   : > { %v3324_v48 = vpop.eup %2086  ;;  %v1501_v4 = vmul.f32 1.442695, %v1454_v30 }
 0x388   : > { %1559 = vadd.xlane.f32.xlu0 %v3324_v48  ;;  %v1408_v55 = vpop.xlane.xlu0 %1407 }
 0x389   : > { %2092 = vpow2.f32 %v1501_v4  ;;  %v1455_v45 = vsub.f32 %v3134_v31, %v1408_v55 }
 0x38b   : > { %v3328_v13 = vpop.eup %2088  ;;  %v1503_v11 = vmul.f32 1.442695, %v1455_v45 }
 0x38c   : > { %v1410_v6 = vpop.xlane.xlu1 %1409  ;;  %1561 = vadd.xlane.f32.xlu1 %v3328_v13 }
 0x38d   : > { %2094 = vpow2.f32 %v1503_v11  ;;  %v1456_v41 = vsub.f32 %v3143_v44, %v1410_v6 }
 0x38f   : > { %v3332_v12 = vpop.eup %2090  ;;  %v1505_v43 = vmul.f32 1.442695, %v1456_v41 }
 0x390   : > { %1563 = vadd.xlane.f32.xlu0 %v3332_v12  ;;  %v1412_v29 = vpop.xlane.xlu0 %1411 }
 0x391   : > { %2096 = vpow2.f32 %v1505_v43  ;;  %v1457_v19 = vsub.f32 %v3152_v61, %v1412_v29 }
 0x393   : > { %v3336_v1 = vpop.eup %2092  ;;  %v1507_v31 = vmul.f32 1.442695, %v1457_v19 }
 0x394   : > { %v1414_v39 = vpop.xlane.xlu1 %1413  ;;  %1565 = vadd.xlane.f32.xlu1 %v3336_v1 }
 0x395   : > { %2098 = vpow2.f32 %v1507_v31  ;;  %v1458_v59 = vsub.f32 %v3161_v57, %v1414_v39 }
 0x397   : > { %v3340_v62 = vpop.eup %2094  ;;  %v1509_v44 = vmul.f32 1.442695, %v1458_v59 }
 0x398   : > { %1567 = vadd.xlane.f32.xlu0 %v3340_v62  ;;  %v1416_v30 = vpop.xlane.xlu0 %1415 }
 0x399   : > { %2100 = vpow2.f32 %v1509_v44  ;;  %v1459_v4 = vsub.f32 %v3170_v3, %v1416_v30 }
 0x39b   : > { %v3344_v55 = vpop.eup %2096  ;;  %v1511_v61 = vmul.f32 1.442695, %v1459_v4 }
 0x39c   : > { %v1418_v45 = vpop.xlane.xlu1 %1417  ;;  %1569 = vadd.xlane.f32.xlu1 %v3344_v55 }
 0x39d   : > { %2102 = vpow2.f32 %v1511_v61  ;;  %v1460_v11 = vsub.f32 %v3179_v24, %v1418_v45 }
 0x39f   : > { %v3348_v6 = vpop.eup %2098  ;;  %v1513_v57 = vmul.f32 1.442695, %v1460_v11 }
 0x3a0   : > { %1571 = vadd.xlane.f32.xlu0 %v3348_v6  ;;  %v1420_v41 = vpop.xlane.xlu0 %1419 }
 0x3a1   : > { %2104 = vpow2.f32 %v1513_v57  ;;  %v1461_v43 = vsub.f32 %v3188_v9, %v1420_v41 }
 0x3a3   : > { %v3352_v29 = vpop.eup %2100  ;;  %v1515_v3 = vmul.f32 1.442695, %v1461_v43 }
 0x3a4   : > { %v1422_v19 = vpop.xlane.xlu1 %1421  ;;  %1573 = vadd.xlane.f32.xlu1 %v3352_v29 }
 0x3a5   : > { %2106 = vpow2.f32 %v1515_v3  ;;  %v1462_v31 = vsub.f32 %v3197_v27, %v1422_v19 }
 0x3a7   : > { %v3356_v39 = vpop.eup %2102  ;;  %v1517_v24 = vmul.f32 1.442695, %v1462_v31 }
 0x3a8   : > { %1575 = vadd.xlane.f32.xlu0 %v3356_v39  ;;  %v1424_v59 = vpop.xlane.xlu0 %1423 }
 0x3a9   : > { %2108 = vpow2.f32 %v1517_v24  ;;  %v1463_v44 = vsub.f32 %v3206_v7, %v1424_v59 }
 0x3ab   : > { %v3360_v30 = vpop.eup %2104  ;;  %v1519_v9 = vmul.f32 1.442695, %v1463_v44 }
 0x3ac   : > { %v1426_v4 = vpop.xlane.xlu1 %1425  ;;  %1577 = vadd.xlane.f32.xlu1 %v3360_v30 }
 0x3ad   : > { %2110 = vpow2.f32 %v1519_v9  ;;  %v1464_v61 = vsub.f32 %v3215_v58, %v1426_v4 }
 0x3af   : > { %v3364_v45 = vpop.eup %2106  ;;  %v1521_v27 = vmul.f32 1.442695, %v1464_v61 }
 0x3b0   : > { %1579 = vadd.xlane.f32.xlu0 %v3364_v45  ;;  %v1428_v11 = vpop.xlane.xlu0 %1427 }
 0x3b1   : > { %2112 = vpow2.f32 %v1521_v27  ;;  %v1465_v57 = vsub.f32 %v3224_v5, %v1428_v11 }
 0x3b3   : > { %v3368_v41 = vpop.eup %2108  ;;  %v1523_v7 = vmul.f32 1.442695, %v1465_v57 }
 0x3b4   : > { %v1430_v43 = vpop.xlane.xlu1 %1429  ;;  %1581 = vadd.xlane.f32.xlu1 %v3368_v41 }
 0x3b5   : > { %2114 = vpow2.f32 %v1523_v7  ;;  %v1466_v3 = vsub.f32 %v3233_v46, %v1430_v43 }
 0x3b7   : > { %v3372_v19 = vpop.eup %2110  ;;  %v1525_v58 = vmul.f32 1.442695, %v1466_v3 }
 0x3b8   : > { %1583 = vadd.xlane.f32.xlu0 %v3372_v19  ;;  %v1432_v31 = vpop.xlane.xlu0 %1431 }
 0x3b9   : > { %2116 = vpow2.f32 %v1525_v58  ;;  %v1467_v24 = vsub.f32 %v3242_v20, %v1432_v31 }
 0x3bb   : > { %v3376_v59 = vpop.eup %2112  ;;  %v1527_v5 = vmul.f32 1.442695, %v1467_v24 }
 0x3bc   : > { %v1434_v44 = vpop.xlane.xlu1 %1433  ;;  %1585 = vadd.xlane.f32.xlu1 %v3376_v59 }
 0x3bd   : > { %2118 = vpow2.f32 %v1527_v5  ;;  %v1468_v9 = vsub.f32 %v3251_v2, %v1434_v44 }
 0x3bf   : > { %v3380_v4 = vpop.eup %2114  ;;  %v1529_v46 = vmul.f32 1.442695, %v1468_v9 }
 0x3c0   : > { %1587 = vadd.xlane.f32.xlu0 %v3380_v4  ;;  %v1436_v61 = vpop.xlane.xlu0 %1435 }
 0x3c1   : > { %2120 = vpow2.f32 %v1529_v46  ;;  %v1469_v27 = vsub.f32 %v3260_v60, %v1436_v61 }
 0x3c3   : > { %v3384_v11 = vpop.eup %2116  ;;  %v1531_v20 = vmul.f32 1.442695, %v1469_v27 }
 0x3c4   : > { %v1438_v57 = vpop.xlane.xlu1 %1437  ;;  %1589 = vadd.xlane.f32.xlu1 %v3384_v11 }
 0x3c5   : > { %2122 = vpow2.f32 %v1531_v20  ;;  %v1470_v7 = vsub.f32 %v3269_v37, %v1438_v57 }
 0x3c7   : > { %v3388_v43 = vpop.eup %2118  ;;  %v1533_v2 = vmul.f32 1.442695, %v1470_v7 }
 0x3c8   : > { %3611 = vst [vmem:[#allocation16_spill] sm:$0xff] %v3388_v43  ;;  %1591 = vadd.xlane.f32.xlu0 %v3388_v43 }
 0x3c9   : > { %2124 = vpow2.f32 %v1533_v2 }
 0x3cb   : > { %v3391_v3 = vpop.eup %2120 }
 0x3cc   : > { %3612 = vst [vmem:[#allocation17_spill] sm:$0xff] %v3391_v3  ;;  %1593 = vadd.xlane.f32.xlu1 %v3391_v3 }
 0x3cf   : > { %v3394_v60 = vpop.eup %2122 }
 0x3d0   : > { %3613 = vst [vmem:[#allocation18_spill] sm:$0xff] %v3394_v60  ;;  %1595 = vadd.xlane.f32.xlu0 %v3394_v60 }
 0x3d3   : > { %v3397_v58 = vpop.eup %2124 }
 0x3d4   : > { %3614 = vst [vmem:[#allocation19_spill] sm:$0xff] %v3397_v58  ;;  %1597 = vadd.xlane.f32.xlu1 %v3397_v58 }
 0x3e5   : > { %v1536_v31 = vpop.xlane.xlu0 %1535 }
 0x3e6   : > { %2126 = vrcp.f32 %v1536_v31 }
 0x3e9   : > { %v1538_v37 = vpop.xlane.xlu1 %1537 }
 0x3ea   : > { %2128 = vrcp.f32 %v1538_v37 }
 0x3ed   : > { %v1540_v24 = vpop.xlane.xlu0 %1539 }
 0x3ee   : > { %2130 = vrcp.f32 %v1540_v24 }
 0x3f0   : > { %v2127_v5 = vpop.eup %2126 }
 0x3f1   : > { %v1631_v44 = vmul.f32 %v2127_v5, %v1536_v31  ;;  %v1542_v9 = vpop.xlane.xlu1 %1541 }
 0x3f2   : > { %2132 = vrcp.f32 %v1542_v9 }
 0x3f3   : > { %v1663_v46 = vsub.f32 2.0, %v1631_v44 }
 0x3f4   : > { %v2129_v61 = vpop.eup %2128 }
 0x3f5   : > { %v1695_v27 = vmul.f32 %v2127_v5, %v1663_v46  ;;  %v1632_v20 = vmul.f32 %v2129_v61, %v1538_v37  ;;  %v1544_v57 = vpop.xlane.xlu0 %1543 }
 0x3f6   : > { %2134 = vrcp.f32 %v1544_v57 }
 0x3f7   : > { %v1727_v7 = vmul.f32 %v3276_v26, %v1695_v27  ;;  %v1664_v2 = vsub.f32 2.0, %v1632_v20 }
 0x3f8   : > { %v2131_v31 = vpop.eup %2130 }
 0x3f9   : > { %v1760_v37 = vsel %vm1759_vm1, %v2985_v47, %v1727_v7  ;;  %v1696_v5 = vmul.f32 %v2129_v61, %v1664_v2  ;;  %v1633_v44 = vmul.f32 %v2131_v31, %v1540_v24  ;;  %v1546_v46 = vpop.xlane.xlu1 %1545 }
 0x3fa   : > { %1792 = vst [vmem:[%s3406_s14] sm:$0xff] %v1760_v37  ;;  %2136 = vrcp.f32 %v1546_v46 }
 0x3fb   : > { %v1728_v58 = vmul.f32 %v3280_v23, %v1696_v5  ;;  %v1665_v60 = vsub.f32 2.0, %v1633_v44 }
 0x3fc   : > { %v2133_v3 = vpop.eup %2132 }
 0x3fd   : > { %v1761_v26 = vsel %vm1759_vm1, %v2994_v50, %v1728_v58  ;;  %v1697_v27 = vmul.f32 %v2131_v31, %v1665_v60  ;;  %v1634_v20 = vmul.f32 %v2133_v3, %v1542_v9  ;;  %v1548_v43 = vpop.xlane.xlu0 %1547 }
 0x3fe   : > { %1793 = vst [vmem:[%s3406_s14 + $0x8] sm:$0xff] %v1761_v26  ;;  %2138 = vrcp.f32 %v1548_v43 }
 0x3ff   : > { %v1729_v47 = vmul.f32 %v3284_v53, %v1697_v27  ;;  %v1666_v24 = vsub.f32 2.0, %v1634_v20 }
 0x400   : > { %v2135_v61 = vpop.eup %2134 }
 0x401   : > { %v1762_v23 = vsel %vm1759_vm1, %v3003_v28, %v1729_v47  ;;  %v1698_v7 = vmul.f32 %v2133_v3, %v1666_v24  ;;  %v1635_v2 = vmul.f32 %v2135_v61, %v1544_v57  ;;  %v1550_v37 = vpop.xlane.xlu1 %1549 }
 0x402   : > { %1794 = vst [vmem:[%s3406_s14 + $0x10] sm:$0xff] %v1762_v23  ;;  %2140 = vrcp.f32 %v1550_v37 }
 0x403   : > { %v1730_v50 = vmul.f32 %v3288_v18, %v1698_v7  ;;  %v1667_v60 = vsub.f32 2.0, %v1635_v2 }
 0x404   : > { %v2137_v58 = vpop.eup %2136 }
 0x405   : > { %v1763_v53 = vsel %vm1759_vm1, %v3012_v34, %v1730_v50  ;;  %v1699_v9 = vmul.f32 %v2135_v61, %v1667_v60  ;;  %v1636_v31 = vmul.f32 %v2137_v58, %v1546_v46  ;;  %v1552_v5 = vpop.xlane.xlu0 %1551 }
 0x406   : > { %1795 = vst [vmem:[%s3406_s14 + $0x18] sm:$0xff] %v1763_v53  ;;  %2142 = vrcp.f32 %v1552_v5 }
 0x407   : > { %v1731_v28 = vmul.f32 %v3292_v52, %v1699_v9  ;;  %v1668_v3 = vsub.f32 2.0, %v1636_v31 }
 0x408   : > { %v2139_v57 = vpop.eup %2138 }
 0x409   : > { %v1764_v18 = vsel %vm1759_vm1, %v3021_v38, %v1731_v28  ;;  %v1700_v44 = vmul.f32 %v2137_v58, %v1668_v3  ;;  %v1637_v26 = vmul.f32 %v2139_v57, %v1548_v43  ;;  %v1554_v27 = vpop.xlane.xlu1 %1553 }
 0x40a   : > { %1796 = vst [vmem:[%s3406_s14 + $0x20] sm:$0xff] %v1764_v18  ;;  %2144 = vrcp.f32 %v1554_v27 }
 0x40b   : > { %v1732_v34 = vmul.f32 %v3296_v54, %v1700_v44  ;;  %v1669_v46 = vsub.f32 2.0, %v1637_v26 }
 0x40c   : > { %v2141_v20 = vpop.eup %2140 }
 0x40d   : > { %v1765_v52 = vsel %vm1759_vm1, %v3030_v56, %v1732_v34  ;;  %v1701_v47 = vmul.f32 %v2139_v57, %v1669_v46  ;;  %v1638_v24 = vmul.f32 %v2141_v20, %v1550_v37  ;;  %v1556_v61 = vpop.xlane.xlu0 %1555 }
 0x40e   : > { %1797 = vst [vmem:[%s3406_s14 + $0x28] sm:$0xff] %v1765_v52  ;;  %2146 = vrcp.f32 %v1556_v61 }
 0x40f   : > { %v1733_v38 = vmul.f32 %v3300_v40, %v1701_v47  ;;  %v1670_v43 = vsub.f32 2.0, %v1638_v24 }
 0x410   : > { %v2143_v23 = vpop.eup %2142 }
 0x411   : > { %v1766_v54 = vsel %vm1759_vm1, %v3039_v16, %v1733_v38  ;;  %v1702_v7 = vmul.f32 %v2141_v20, %v1670_v43  ;;  %v1639_v2 = vmul.f32 %v2143_v23, %v1552_v5  ;;  %v1558_v50 = vpop.xlane.xlu1 %1557 }
 0x412   : > { %1798 = vst [vmem:[%s3406_s14 + $0x30] sm:$0xff] %v1766_v54  ;;  %2148 = vrcp.f32 %v1558_v50 }
 0x413   : > { %v1734_v56 = vmul.f32 %v3304_v22, %v1702_v7  ;;  %v1671_v37 = vsub.f32 2.0, %v1639_v2 }
 0x414   : > { %v2145_v60 = vpop.eup %2144 }
 0x415   : > { %v1767_v40 = vsel %vm1759_vm1, %v3048_v42, %v1734_v56  ;;  %v1703_v58 = vmul.f32 %v2143_v23, %v1671_v37  ;;  %v1640_v53 = vmul.f32 %v2145_v60, %v1554_v27  ;;  %v1560_v9 = vpop.xlane.xlu0 %1559 }
 0x416   : > { %1799 = vst [vmem:[%s3406_s14 + $0x38] sm:$0xff] %v1767_v40  ;;  %2150 = vrcp.f32 %v1560_v9 }
 0x417   : > { %v1735_v16 = vmul.f32 %v3308_v10, %v1703_v58  ;;  %v1672_v31 = vsub.f32 2.0, %v1640_v53 }
 0x418   : > { %v2147_v5 = vpop.eup %2146 }
 0x419   : > { %v1768_v22 = vsel %vm1759_vm1, %v3057_v14, %v1735_v16  ;;  %v1704_v28 = vmul.f32 %v2145_v60, %v1672_v31  ;;  %v1641_v3 = vmul.f32 %v2147_v5, %v1556_v61  ;;  %v1562_v57 = vpop.xlane.xlu1 %1561 }
 0x41a   : > { %1800 = vst [vmem:[%s3406_s14 + $0x40] sm:$0xff] %v1768_v22  ;;  %2152 = vrcp.f32 %v1562_v57 }
 0x41b   : > { %v1736_v42 = vmul.f32 %v3312_v33, %v1704_v28  ;;  %v1673_v18 = vsub.f32 2.0, %v1641_v3 }
 0x41c   : > { %v2149_v44 = vpop.eup %2148 }
 0x41d   : > { %v1769_v10 = vsel %vm1759_vm1, %v3066_v49, %v1736_v42  ;;  %v1705_v26 = vmul.f32 %v2147_v5, %v1673_v18  ;;  %v1642_v27 = vmul.f32 %v2149_v44, %v1558_v50  ;;  %v1564_v34 = vpop.xlane.xlu0 %1563 }
 0x41e   : > { %1801 = vst [vmem:[%s3406_s14 + $0x48] sm:$0xff] %v1769_v10  ;;  %2154 = vrcp.f32 %v1564_v34 }
 0x41f   : > { %v1737_v14 = vmul.f32 %v3316_v51, %v1705_v26  ;;  %v1674_v46 = vsub.f32 2.0, %v1642_v27 }
 0x420   : > { %v2151_v20 = vpop.eup %2150 }
 0x421   : > { %v1770_v33 = vsel %vm1759_vm1, %v3075_v25, %v1737_v14  ;;  %v1706_v52 = vmul.f32 %v2149_v44, %v1674_v46  ;;  %v1643_v47 = vmul.f32 %v2151_v20, %v1560_v9  ;;  %v1566_v24 = vpop.xlane.xlu1 %1565 }
 0x422   : > { %1802 = vst [vmem:[%s3406_s14 + $0x50] sm:$0xff] %v1770_v33  ;;  %2156 = vrcp.f32 %v1566_v24 }
 0x423   : > { %v1738_v49 = vmul.f32 %v3320_v32, %v1706_v52  ;;  %v1675_v61 = vsub.f32 2.0, %v1643_v47 }
 0x424   : > { %v2153_v38 = vpop.eup %2152 }
 0x425   : > { %v1771_v51 = vsel %vm1759_vm1, %v3084_v0, %v1738_v49  ;;  %v1707_v43 = vmul.f32 %v2151_v20, %v1675_v61  ;;  %v1644_v23 = vmul.f32 %v2153_v38, %v1562_v57  ;;  %v1568_v54 = vpop.xlane.xlu0 %1567  ;;  %v3615_v61 = vld [vmem:[#allocation2_spill] sm:$0xff] }
 0x426   : > { %1803 = vst [vmem:[%s3406_s14 + $0x58] sm:$0xff] %v1771_v51  ;;  %2158 = vrcp.f32 %v1568_v54 }
 0x427   : > { %v1739_v25 = vmul.f32 %v3324_v48, %v1707_v43  ;;  %v1676_v7 = vsub.f32 2.0, %v1644_v23 }
 0x428   : > { %v2155_v2 = vpop.eup %2154 }
 0x429   : > { %v1772_v32 = vsel %vm1759_vm1, %v3093_v36, %v1739_v25  ;;  %v1708_v50 = vmul.f32 %v2153_v38, %v1676_v7  ;;  %v1645_v56 = vmul.f32 %v2155_v2, %v1564_v34  ;;  %v1570_v37 = vpop.xlane.xlu1 %1569  ;;  %v3616_v25 = vld [vmem:[#allocation3_spill] sm:$0xff] }
 0x42a   : > { %1804 = vst [vmem:[%s3406_s14 + $0x60] sm:$0xff] %v1772_v32  ;;  %2160 = vrcp.f32 %v1570_v37 }
 0x42b   : > { %v1740_v0 = vmul.f32 %v3328_v13, %v1708_v50  ;;  %v1677_v60 = vsub.f32 2.0, %v1645_v56 }
 0x42c   : > { %v2157_v40 = vpop.eup %2156 }
 0x42d   : > { %v1773_v48 = vsel %vm1759_vm1, %v3102_v63, %v1740_v0  ;;  %v1709_v58 = vmul.f32 %v2155_v2, %v1677_v60  ;;  %v1646_v53 = vmul.f32 %v2157_v40, %v1566_v24  ;;  %v1572_v9 = vpop.xlane.xlu0 %1571  ;;  %v3617_v0 = vld [vmem:[#allocation4_spill] sm:$0xff] }
 0x42e   : > { %1805 = vst [vmem:[%s3406_s14 + $0x68] sm:$0xff] %v1773_v48  ;;  %2162 = vrcp.f32 %v1572_v9 }
 0x42f   : > { %v1741_v36 = vmul.f32 %v3332_v12, %v1709_v58  ;;  %v1678_v16 = vsub.f32 2.0, %v1646_v53 }
 0x430   : > { %v2159_v31 = vpop.eup %2158 }
 0x431   : > { %v1774_v13 = vsel %vm1759_vm1, %v3111_v8, %v1741_v36  ;;  %v1710_v5 = vmul.f32 %v2157_v40, %v1678_v16  ;;  %v1647_v22 = vmul.f32 %v2159_v31, %v1568_v54  ;;  %v1574_v28 = vpop.xlane.xlu1 %1573  ;;  %v3618_v36 = vld [vmem:[#allocation5_spill] sm:$0xff] }
 0x432   : > { %1806 = vst [vmem:[%s3406_s14 + $0x70] sm:$0xff] %v1774_v13  ;;  %2164 = vrcp.f32 %v1574_v28 }
 0x433   : > { %v1742_v63 = vmul.f32 %v3336_v1, %v1710_v5  ;;  %v1679_v3 = vsub.f32 2.0, %v1647_v22 }
 0x434   : > { %v2161_v57 = vpop.eup %2160 }
 0x435   : > { %v1775_v12 = vsel %vm1759_vm1, %v3120_v15, %v1742_v63  ;;  %v1711_v42 = vmul.f32 %v2159_v31, %v1679_v3  ;;  %v1648_v18 = vmul.f32 %v2161_v57, %v1570_v37  ;;  %v1576_v44 = vpop.xlane.xlu0 %1575  ;;  %v3619_v63 = vld [vmem:[#allocation6_spill] sm:$0xff] }
 0x436   : > { %1807 = vst [vmem:[%s3406_s14 + $0x78] sm:$0xff] %v1775_v12  ;;  %2166 = vrcp.f32 %v1576_v44 }
 0x437   : > { %v1743_v8 = vmul.f32 %v3340_v62, %v1711_v42  ;;  %v1680_v10 = vsub.f32 2.0, %v1648_v18 }
 0x438   : > { %v2163_v26 = vpop.eup %2162 }
 0x439   : > { %v1776_v1 = vsel %vm1759_vm1, %v3129_v21, %v1743_v8  ;;  %v1712_v27 = vmul.f32 %v2161_v57, %v1680_v10  ;;  %v1649_v34 = vmul.f32 %v2163_v26, %v1572_v9  ;;  %v1578_v14 = vpop.xlane.xlu1 %1577  ;;  %v3620_v8 = vld [vmem:[#allocation7_spill] sm:$0xff] }
 0x43a   : > { %1808 = vst [vmem:[%s3406_s14 + $0x80] sm:$0xff] %v1776_v1  ;;  %2168 = vrcp.f32 %v1578_v14 }
 0x43b   : > { %v1744_v15 = vmul.f32 %v3344_v55, %v1712_v27  ;;  %v1681_v46 = vsub.f32 2.0, %v1649_v34 }
 0x43c   : > { %v2165_v20 = vpop.eup %2164 }
 0x43d   : > { %v1777_v62 = vsel %vm1759_vm1, %v3138_v35, %v1744_v15  ;;  %v1713_v33 = vmul.f32 %v2163_v26, %v1681_v46  ;;  %v1650_v52 = vmul.f32 %v2165_v20, %v1574_v28  ;;  %v1580_v47 = vpop.xlane.xlu0 %1579  ;;  %v3621_v15 = vld [vmem:[#allocation8_spill] sm:$0xff] }
 0x43e   : > { %1809 = vst [vmem:[%s3406_s14 + $0x88] sm:$0xff] %v1777_v62  ;;  %2170 = vrcp.f32 %v1580_v47 }
 0x43f   : > { %v1745_v21 = vmul.f32 %v3348_v6, %v1713_v33  ;;  %v1682_v24 = vsub.f32 2.0, %v1650_v52 }
 0x440   : > { %v2167_v49 = vpop.eup %2166 }
 0x441   : > { %v1778_v55 = vsel %vm1759_vm1, %v3615_v61, %v1745_v21  ;;  %v1714_v38 = vmul.f32 %v2165_v20, %v1682_v24  ;;  %v1651_v51 = vmul.f32 %v2167_v49, %v1576_v44  ;;  %v1582_v43 = vpop.xlane.xlu1 %1581  ;;  %v3622_v21 = vld [vmem:[#allocation9_spill] sm:$0xff] }
 0x442   : > { %1810 = vst [vmem:[%s3406_s14 + $0x90] sm:$0xff] %v1778_v55  ;;  %2172 = vrcp.f32 %v1582_v43 }
 0x443   : > { %v1746_v35 = vmul.f32 %v3352_v29, %v1714_v38  ;;  %v1683_v23 = vsub.f32 2.0, %v1651_v51 }
 0x444   : > { %v2169_v54 = vpop.eup %2168 }
 0x445   : > { %v1779_v6 = vsel %vm1759_vm1, %v3616_v25, %v1746_v35  ;;  %v1715_v7 = vmul.f32 %v2167_v49, %v1683_v23  ;;  %v1652_v2 = vmul.f32 %v2169_v54, %v1578_v14  ;;  %v1584_v32 = vpop.xlane.xlu0 %1583 }
 0x446   : > { %1811 = vst [vmem:[%s3406_s14 + $0x98] sm:$0xff] %v1779_v6  ;;  %2174 = vrcp.f32 %v1584_v32 }
 0x447   : > { %v1747_v50 = vmul.f32 %v3356_v39, %v1715_v7  ;;  %v1684_v56 = vsub.f32 2.0, %v1652_v2  ;;  %v3624_v2 = vld [vmem:[#allocation11_spill] sm:$0xff] }
 0x448   : > { %v2171_v37 = vpop.eup %2170 }
 0x449   : > { %v1780_v29 = vsel %vm1759_vm1, %v3617_v0, %v1747_v50  ;;  %v1716_v60 = vmul.f32 %v2169_v54, %v1684_v56  ;;  %v1653_v40 = vmul.f32 %v2171_v37, %v1580_v47  ;;  %v1586_v48 = vpop.xlane.xlu1 %1585  ;;  %v3625_v56 = vld [vmem:[#allocation16_spill] sm:$0xff] }
 0x44a   : > { %1812 = vst [vmem:[%s3406_s14 + $0xa0] sm:$0xff] %v1780_v29  ;;  %2176 = vrcp.f32 %v1586_v48 }
 0x44b   : > { %v1748_v58 = vmul.f32 %v3360_v30, %v1716_v60  ;;  %v1685_v53 = vsub.f32 2.0, %v1653_v40  ;;  %v3626_v60 = vld [vmem:[#allocation12_spill] sm:$0xff] }
 0x44c   : > { %v2173_v9 = vpop.eup %2172 }
 0x44d   : > { %v1781_v39 = vsel %vm1759_vm1, %v3618_v36, %v1748_v58  ;;  %v1717_v16 = vmul.f32 %v2171_v37, %v1685_v53  ;;  %v1654_v31 = vmul.f32 %v2173_v9, %v1582_v43  ;;  %v1588_v13 = vpop.xlane.xlu0 %1587  ;;  %v3623_v43 = vld [vmem:[#allocation10_spill] sm:$0xff]  ;;  %v3627_v58 = vld [vmem:[#allocation17_spill] sm:$0xff] }
 0x44e   : > { %1813 = vst [vmem:[%s3406_s14 + $0xa8] sm:$0xff] %v1781_v39  ;;  %2178 = vrcp.f32 %v1588_v13  ;;  %v3628_v39 = vld [vmem:[#allocation13_spill] sm:$0xff] }
 0x44f   : > { %v1749_v5 = vmul.f32 %v3364_v45, %v1717_v16  ;;  %v1686_v22 = vsub.f32 2.0, %v1654_v31 }
 0x450   : > { %v2175_v28 = vpop.eup %2174 }
 0x451   : > { %v1782_v30 = vsel %vm1759_vm1, %v3619_v63, %v1749_v5  ;;  %v1718_v3 = vmul.f32 %v2173_v9, %v1686_v22  ;;  %v1655_v57 = vmul.f32 %v2175_v28, %v1584_v32  ;;  %v1590_v12 = vpop.xlane.xlu1 %1589  ;;  %v3629_v5 = vld [vmem:[#allocation18_spill] sm:$0xff] }
 0x452   : > { %1814 = vst [vmem:[%s3406_s14 + $0xb0] sm:$0xff] %v1782_v30  ;;  %2180 = vrcp.f32 %v1590_v12  ;;  %v3630_v63 = vld [vmem:[#allocation14_spill] sm:$0xff] }
 0x453   : > { %v1750_v42 = vmul.f32 %v3368_v41, %v1718_v3  ;;  %v1687_v18 = vsub.f32 2.0, %v1655_v57  ;;  %v3631_v57 = vld [vmem:[#allocation19_spill] sm:$0xff] }
 0x454   : > { %v2177_v44 = vpop.eup %2176 }
 0x455   : > { %v1783_v45 = vsel %vm1759_vm1, %v3620_v8, %v1750_v42  ;;  %v1719_v10 = vmul.f32 %v2175_v28, %v1687_v18  ;;  %v1656_v26 = vmul.f32 %v2177_v44, %v1586_v48  ;;  %v1592_v1 = vpop.xlane.xlu0 %1591  ;;  %v3632_v42 = vld [vmem:[#allocation15_spill] sm:$0xff] }
 0x456   : > { %1815 = vst [vmem:[%s3406_s14 + $0xb8] sm:$0xff] %v1783_v45  ;;  %2182 = vrcp.f32 %v1592_v1 }
 0x457   : > { %v1751_v27 = vmul.f32 %v3372_v19, %v1719_v10  ;;  %v1688_v34 = vsub.f32 2.0, %v1656_v26 }
 0x458   : > { %v2179_v14 = vpop.eup %2178 }
 0x459   : > { %v1784_v41 = vsel %vm1759_vm1, %v3621_v15, %v1751_v27  ;;  %v1720_v46 = vmul.f32 %v2177_v44, %v1688_v34  ;;  %v1657_v20 = vmul.f32 %v2179_v14, %v1588_v13  ;;  %v1594_v62 = vpop.xlane.xlu1 %1593 }
 0x45a   : > { %1816 = vst [vmem:[%s3406_s14 + $0xc0] sm:$0xff] %v1784_v41  ;;  %2184 = vrcp.f32 %v1594_v62 }
 0x45b   : > { %v1752_v33 = vmul.f32 %v3376_v59, %v1720_v46  ;;  %v1689_v52 = vsub.f32 2.0, %v1657_v20 }
 0x45c   : > { %v2181_v47 = vpop.eup %2180 }
 0x45d   : > { %v1785_v19 = vsel %vm1759_vm1, %v3622_v21, %v1752_v33  ;;  %v1721_v24 = vmul.f32 %v2179_v14, %v1689_v52  ;;  %v1658_v49 = vmul.f32 %v2181_v47, %v1590_v12  ;;  %v1596_v61 = vpop.xlane.xlu0 %1595 }
 0x45e   : > { %1817 = vst [vmem:[%s3406_s14 + $0xc8] sm:$0xff] %v1785_v19  ;;  %2186 = vrcp.f32 %v1596_v61 }
 0x45f   : > { %v1753_v55 = vmul.f32 %v3380_v4, %v1721_v24  ;;  %v1690_v38 = vsub.f32 2.0, %v1658_v49 }
 0x460   : > { %v2183_v51 = vpop.eup %2182 }
 0x461   : > { %v1786_v59 = vsel %vm1759_vm1, %v3623_v43, %v1753_v55  ;;  %v1722_v35 = vmul.f32 %v2181_v47, %v1690_v38  ;;  %v1659_v23 = vmul.f32 %v2183_v51, %v1592_v1  ;;  %v1598_v54 = vpop.xlane.xlu1 %1597 }
 0x462   : > { %1818 = vst [vmem:[%s3406_s14 + $0xd0] sm:$0xff] %v1786_v59  ;;  %2188 = vrcp.f32 %v1598_v54 }
 0x463   : > { %v1754_v25 = vmul.f32 %v3384_v11, %v1722_v35  ;;  %v1691_v6 = vsub.f32 2.0, %v1659_v23 }
 0x464   : > { %v2185_v7 = vpop.eup %2184 }
 0x465   : > { %v1787_v4 = vsel %vm1759_vm1, %v3624_v2, %v1754_v25  ;;  %v1723_v32 = vmul.f32 %v2183_v51, %v1691_v6  ;;  %v1660_v50 = vmul.f32 %v2185_v7, %v1594_v62 }
 0x466   : > { %1819 = vst [vmem:[%s3406_s14 + $0xd8] sm:$0xff] %v1787_v4 }
 0x467   : > { %v1755_v37 = vmul.f32 %v3625_v56, %v1723_v32  ;;  %v1692_v0 = vsub.f32 2.0, %v1660_v50 }
 0x468   : > { %v2187_v29 = vpop.eup %2186 }
 0x469   : > { %v1788_v40 = vsel %vm1759_vm1, %v3626_v60, %v1755_v37  ;;  %v1724_v11 = vmul.f32 %v2185_v7, %v1692_v0  ;;  %v1661_v48 = vmul.f32 %v2187_v29, %v1596_v61 }
 0x46a   : > { %1820 = vst [vmem:[%s3406_s14 + $0xe0] sm:$0xff] %v1788_v40 }
 0x46b   : > { %v1756_v53 = vmul.f32 %v3627_v58, %v1724_v11  ;;  %v1693_v9 = vsub.f32 2.0, %v1661_v48 }
 0x46c   : > { %v2189_v36 = vpop.eup %2188 }
 0x46d   : > { %v1789_v16 = vsel %vm1759_vm1, %v3628_v39, %v1756_v53  ;;  %v1725_v31 = vmul.f32 %v2187_v29, %v1693_v9  ;;  %v1662_v13 = vmul.f32 %v2189_v36, %v1598_v54 }
 0x46e   : > { %1821 = vst [vmem:[%s3406_s14 + $0xe8] sm:$0xff] %v1789_v16 }
 0x46f   : > { %v1757_v22 = vmul.f32 %v3629_v5, %v1725_v31  ;;  %v1694_v28 = vsub.f32 2.0, %v1662_v13 }
 0x471   : > { %v1790_v30 = vsel %vm1759_vm1, %v3630_v63, %v1757_v22  ;;  %v1726_v3 = vmul.f32 %v2189_v36, %v1694_v28 }
 0x472   : > { %1822 = vst [vmem:[%s3406_s14 + $0xf0] sm:$0xff] %v1790_v30 }
 0x473   : > { %v1758_v12 = vmul.f32 %v3631_v57, %v1726_v3 }
 0x475   : > { %v1791_v18 = vsel %vm1759_vm1, %v3632_v42, %v1758_v12 }
 0x476   : > { %1823 = vst [vmem:[%s3406_s14 + $0xf8] sm:$0xff] %v1791_v18 }
 0x477 PF: > { %s17_s24 = sadd.s32 1, %s2196_s24  }
 0x478   : > { %p14_p4 = scmp.ge.s32.totalorder %s17_s24, 4  }
 0x47a   :  { %16 = sbr.rel (!%p14_p4) target bundleno = 1 (0x1), region = 78 }

</bundles_post_ra>
